<compile_context>
chip_gen: v7x
topology: tpu7x:2x2x1
jax: 0.10.0
libtpu: 0.0.40
codegen_flags: <defaults>
</compile_context>

<pallas_src>
import functools

import jax
import jax.numpy as jnp
from jax import lax
from jax.experimental import pallas as pl
from jax.experimental.pallas import tpu as pltpu

BN_EPS = 1e-5
LANE = 128
SUBLANE = 8
EXPANSION = 4


def _round_up(n, m):
    return (n + m - 1) // m * m


def _fold_bn(w, bn, eps=BN_EPS):
    """Fold eval-mode BatchNorm2d into the preceding bias-free conv weight."""
    scale = bn["gamma"] * lax.rsqrt(bn["var"] + eps)          # (cout,)
    w_f = w * scale                                           # broadcast over last (cout) dim
    b_f = bn["beta"] - bn["mean"] * scale
    return w_f.astype(jnp.float32), b_f.reshape(1, -1).astype(jnp.float32)


def _vmem_limit_bytes():
    """~5/8 of physical VMEM: ≈40 MiB on v7x (64 MiB/TC), ≈80 MiB on v5e/v6e (128 MiB)."""
    try:
        cap = getattr(pltpu.get_tpu_info(), "vmem_capacity_bytes", None)
        if cap:
            return int(min(cap * 5 // 8, 96 * 1024 * 1024))
    except Exception:
        pass
    return 40 * 1024 * 1024


def bottleneck_kernel(x_ref, w1_ref, b1_ref, w2_ref, b2_ref, w3_ref, b3_ref,
                      o_ref, h1s_ref, *, width, row_chunk):
    """One batch element per grid step.  x_ref: (1, H, Wp, Cp) bf16, o_ref f32.

    h1s_ref: (3, H+2, Wp, Pp) bf16 scratch holding the conv1 output with a 1-row zero
    halo, as three column-shifted planes: [0]=h1[:, w-1], [1]=h1[:, w], [2]=h1[:, w+1].
    """
    _, H, Wp, Cp = x_ref.shape
    Pp = w1_ref.shape[1]

    # --- Phase A: conv1 (1x1, BN1 folded) + ReLU, build shifted bf16 planes ---
    for r0 in range(0, H, row_chunk):
        rh = min(row_chunk, H - r0)
        xc = x_ref[0, r0:r0 + rh].reshape(rh * Wp, Cp)                       # bf16
        h1 = jnp.dot(xc, w1_ref[...], preferred_element_type=jnp.float32) + b1_ref[...]
        h1 = jnp.maximum(h1, 0.0).reshape(rh, Wp, Pp)
        if width < Wp:
            # zero the padded W columns so conv2 sees true zero padding at the right edge
            col = lax.broadcasted_iota(jnp.int32, (1, Wp, 1), 1)
            h1 = jnp.where(col < width, h1, 0.0)
        h1b = h1.astype(jnp.bfloat16)

        zcol = jnp.zeros((rh, 1, Pp), jnp.bfloat16)
        h1s_ref[0, r0 + 1:r0 + rh + 1] = jnp.concatenate(                    # h1[:, w-1]
            [zcol, h1b[:, :Wp - 1, :]], axis=1)
        h1s_ref[1, r0 + 1:r0 + rh + 1] = h1b                                 # h1[:, w]
        h1s_ref[2, r0 + 1:r0 + rh + 1] = jnp.concatenate(                    # h1[:, w+1]
            [h1b[:, 1:, :], zcol], axis=1)

    # zero only the halo rows (interior is fully overwritten above)
    zrow = jnp.zeros((Wp, Pp), jnp.bfloat16)
    for p in range(3):
        h1s_ref[p, 0] = zrow
        h1s_ref[p, H + 1] = zrow

    # --- Phase B: conv2 (3x3, pad 1, BN2 folded) + ReLU, conv3 (1x1, BN3 folded),
    #              residual add, ReLU ---
    for r0 in range(0, H, row_chunk):
        rh = min(row_chunk, H - r0)
        M = rh * Wp

        # out[h, w] += h1[h+dy-1, w+dx-1] @ w2[dy, dx];  row shift via scratch row halo,
        # column shift via the pre-built planes -> all 9 reads are aligned slab slices.
        acc = jnp.dot(h1s_ref[1, r0 + 1:r0 + rh + 1].reshape(M, Pp), w2_ref[1, 1],
                      preferred_element_type=jnp.float32)
        for dy in range(3):
            for dx in range(3):
                if dy == 1 and dx == 1:
                    continue
                patch = h1s_ref[dx, r0 + dy:r0 + dy + rh].reshape(M, Pp)
                acc = acc + jnp.dot(patch, w2_ref[dy, dx],
                                    preferred_element_type=jnp.float32)
        h2 = jnp.maximum(acc + b2_ref[...], 0.0).astype(jnp.bfloat16)

        h3 = jnp.dot(h2, w3_ref[...], preferred_element_type=jnp.float32) + b3_ref[...]
        resid = x_ref[0, r0:r0 + rh].reshape(M, Cp).astype(jnp.float32)
        out = jnp.maximum(h3 + resid, 0.0)
        o_ref[0, r0:r0 + rh] = out.reshape(rh, Wp, Cp)


def bottleneck_pallas(x_nchw, params):
    B, Cin, H, W = x_nchw.shape
    P = params["w1"].shape[1]               # planes
    Cout = params["w3"].shape[1]            # planes * expansion
    assert Cout == Cin, "downsample=None path requires inplanes == planes * expansion"

    # fold eval-mode BN into conv weights (wrapper-side, once)
    w1f, b1f = _fold_bn(params["w1"], params["bn1"])
    w2f, b2f = _fold_bn(params["w2"], params["bn2"])
    w3f, b3f = _fold_bn(params["w3"], params["bn3"])

    Cp = _round_up(Cin, LANE)               # lane-dense channels
    Pp = _round_up(P, LANE)
    Wp = _round_up(W, SUBLANE)              # sublane-aligned width

    # NHWC, bf16 matmul operands (halves HBM traffic / VMEM footprint, feeds MXU peak)
    x_nhwc = jnp.transpose(x_nchw, (0, 2, 3, 1))
    x_p = jnp.pad(x_nhwc, ((0, 0), (0, 0), (0, Wp - W), (0, Cp - Cin))).astype(jnp.bfloat16)

    w1p = jnp.pad(w1f, ((0, Cp - Cin), (0, Pp - P))).astype(jnp.bfloat16)
    b1p = jnp.pad(b1f, ((0, 0), (0, Pp - P)))
    w2p = jnp.pad(w2f, ((0, 0), (0, 0), (0, Pp - P), (0, Pp - P))).astype(jnp.bfloat16)
    b2p = jnp.pad(b2f, ((0, 0), (0, Pp - P)))
    w3p = jnp.pad(w3f, ((0, Pp - P), (0, Cp - Cin))).astype(jnp.bfloat16)
    b3p = jnp.pad(b3f, ((0, 0), (0, Cp - Cin)))

    # matmul M dim per chunk ~256 rows -> good MXU fill, f32 acc stays <= ~32 vregs
    row_chunk = min(H, max(1, 256 // Wp))

    full = lambda shape: pl.BlockSpec(shape, lambda b: (0,) * len(shape))
    img_spec = pl.BlockSpec((1, H, Wp, Cp), lambda b: (b, 0, 0, 0))

    kernel = functools.partial(bottleneck_kernel, width=W, row_chunk=row_chunk)

    out = pl.pallas_call(
        kernel,
        out_shape=jax.ShapeDtypeStruct((B, H, Wp, Cp), jnp.float32),
        grid=(B,),
        in_specs=[
            img_spec,
            full((Cp, Pp)), full((1, Pp)),          # conv1 (BN folded), bf16 / f32 bias
            full((3, 3, Pp, Pp)), full((1, Pp)),    # conv2 (BN folded)
            full((Pp, Cp)), full((1, Cp)),          # conv3 (BN folded)
        ],
        out_specs=img_spec,
        scratch_shapes=[pltpu.VMEM((3, H + 2, Wp, Pp), jnp.bfloat16)],
        compiler_params=pltpu.CompilerParams(
            dimension_semantics=("parallel",),
            vmem_limit_bytes=_vmem_limit_bytes()),
    )(x_p, w1p, b1p, w2p, b2p, w3p, b3p)

    out = out[:, :, :W, :Cin]
    return jnp.transpose(out, (0, 3, 1, 2))


def bottleneck_reference(x_nchw, params, eps=BN_EPS):
    """Pure-JAX f32 reference mirroring the PyTorch forward (BN in eval mode, stride=1)."""
    x = jnp.transpose(x_nchw, (0, 2, 3, 1)).astype(jnp.float32)   # NHWC

    def bn_apply(h, bn):
        scale = bn["gamma"] * lax.rsqrt(bn["var"] + eps)
        return h * scale + (bn["beta"] - bn["mean"] * scale)

    h1 = jax.nn.relu(bn_apply(jnp.einsum("bhwc,ck->bhwk", x, params["w1"]), params["bn1"]))
    h2 = lax.conv_general_dilated(h1, params["w2"], window_strides=(1, 1), padding="SAME",
                                  dimension_numbers=("NHWC", "HWIO", "NHWC"))
    h2 = jax.nn.relu(bn_apply(h2, params["bn2"]))
    h3 = bn_apply(jnp.einsum("bhwk,kc->bhwc", h2, params["w3"]), params["bn3"])
    out = jax.nn.relu(h3 + x)
    return jnp.transpose(out, (0, 3, 1, 2))


def make_params(key, inplanes, planes):
    ks = jax.random.split(key, 6)

    def conv_w(k, cin, cout):
        # torch Conv2d 1x1 weight is (cout, cin, 1, 1); stored here as (cin, cout) for x @ W.
        return jax.random.normal(k, (cin, cout), jnp.float32) / jnp.sqrt(cin)

    def conv3_w(k, cin, cout):
        # torch Conv2d 3x3 weight is (cout, cin, 3, 3); stored here as (3, 3, cin, cout) (HWIO).
        return jax.random.normal(k, (3, 3, cin, cout), jnp.float32) / jnp.sqrt(9 * cin)

    def bn(k, c):
        k1, k2, k3, k4 = jax.random.split(k, 4)
        return {
            "gamma": 1.0 + 0.1 * jax.random.normal(k1, (c,), jnp.float32),
            "beta": 0.1 * jax.random.normal(k2, (c,), jnp.float32),
            "mean": 0.1 * jax.random.normal(k3, (c,), jnp.float32),
            "var": jnp.abs(jax.random.normal(k4, (c,), jnp.float32)) + 0.5,
        }

    return {
        "w1": conv_w(ks[0], inplanes, planes),               "bn1": bn(ks[1], planes),
        "w2": conv3_w(ks[2], planes, planes),                "bn2": bn(ks[3], planes),
        "w3": conv_w(ks[4], planes, planes * EXPANSION),     "bn3": bn(ks[5], planes * EXPANSION),
    }


if __name__ == "__main__":
    B, planes, H, W = 2, 4, 16, 16
    inplanes = planes * EXPANSION        # downsample=None requires inplanes == planes*4

    key = jax.random.PRNGKey(0)
    kx, kp = jax.random.split(key)
    x = jax.random.normal(kx, (B, inplanes, H, W), jnp.float32)
    params = make_params(kp, inplanes, planes)

    y = jax.block_until_ready(bottleneck_pallas(x, params))
    y_ref = bottleneck_reference(x, params)

    assert y.shape == (B, inplanes, H, W)
    # bf16 MXU operands vs f32 reference -> bf16-appropriate tolerance
    assert jnp.allclose(y, y_ref, atol=1e-1, rtol=5e-2), "mismatch vs pure-JAX reference"

    print("KERNEL_OK")
</pallas_src>

<mosaic_0001>
module attributes {stable_mosaic.version = 11 : i64} {
  func.func @bottleneck_kernel(%arg0: i32, %arg1: memref<1x16x16x128xbf16, #tpu.memory_space<vmem>>, %arg2: memref<128x128xbf16, #tpu.memory_space<vmem>>, %arg3: memref<1x128xf32, #tpu.memory_space<vmem>>, %arg4: memref<3x3x128x128xbf16, #tpu.memory_space<vmem>>, %arg5: memref<1x128xf32, #tpu.memory_space<vmem>>, %arg6: memref<128x128xbf16, #tpu.memory_space<vmem>>, %arg7: memref<1x128xf32, #tpu.memory_space<vmem>>, %arg8: memref<1x16x16x128xf32, #tpu.memory_space<vmem>>, %arg9: memref<3x18x16x128xbf16, #tpu.memory_space<vmem>>) attributes {dimension_semantics = [#tpu.dimension_semantics<parallel>], iteration_bounds = array<i64: 2>, scalar_prefetch = 0 : i64, scratch_operands = 1 : i64, tpu.core_type = #tpu.core_type<tc>, window_params = [{transform_indices = @transform_0, window_bounds = array<i64: 1, 16, 16, 128>}, {pipeline_mode = #tpu.pipeline_mode<synchronous>, transform_indices = @transform_1, window_bounds = array<i64: 128, 128>}, {pipeline_mode = #tpu.pipeline_mode<synchronous>, transform_indices = @transform_2, window_bounds = array<i64: 1, 128>}, {pipeline_mode = #tpu.pipeline_mode<synchronous>, transform_indices = @transform_3, window_bounds = array<i64: 3, 3, 128, 128>}, {pipeline_mode = #tpu.pipeline_mode<synchronous>, transform_indices = @transform_4, window_bounds = array<i64: 1, 128>}, {pipeline_mode = #tpu.pipeline_mode<synchronous>, transform_indices = @transform_5, window_bounds = array<i64: 128, 128>}, {pipeline_mode = #tpu.pipeline_mode<synchronous>, transform_indices = @transform_6, window_bounds = array<i64: 1, 128>}, {transform_indices = @transform_7, window_bounds = array<i64: 1, 16, 16, 128>}]} {
    %c0 = arith.constant 0 : index
    %c0_0 = arith.constant 0 : index
    %c0_1 = arith.constant 0 : index
    %c0_2 = arith.constant 0 : index
    %0 = vector.load %arg1[%c0, %c0_0, %c0_1, %c0_2] : memref<1x16x16x128xbf16, #tpu.memory_space<vmem>>, vector<1x16x16x128xbf16>
    %1 = vector.shape_cast %0 : vector<1x16x16x128xbf16> to vector<16x16x128xbf16>
    %2 = vector.shape_cast %1 : vector<16x16x128xbf16> to vector<256x128xbf16>
    %c0_3 = arith.constant 0 : index
    %c0_4 = arith.constant 0 : index
    %3 = vector.load %arg2[%c0_3, %c0_4] : memref<128x128xbf16, #tpu.memory_space<vmem>>, vector<128x128xbf16>
    %cst = arith.constant dense<0.000000e+00> : vector<256x128xf32>
    %4 = tpu.matmul %2, %3, %cst {dimension_numbers = #tpu.dot_dimension_numbers<[1], [0], [0], [1], [0, 0, 1, 1], [], []>} : vector<256x128xbf16>, vector<128x128xbf16>, vector<256x128xf32> -> vector<256x128xf32>
    %c0_5 = arith.constant 0 : index
    %c0_6 = arith.constant 0 : index
    %5 = vector.load %arg3[%c0_5, %c0_6] : memref<1x128xf32, #tpu.memory_space<vmem>>, vector<1x128xf32>
    %6 = vector.broadcast %5 : vector<1x128xf32> to vector<256x128xf32>
    %7 = arith.addf %4, %6 : vector<256x128xf32>
    %cst_7 = arith.constant 0.000000e+00 : f32
    %8 = vector.broadcast %cst_7 : f32 to vector<256x128xf32>
    %9 = arith.maximumf %7, %8 : vector<256x128xf32>
    %10 = vector.shape_cast %9 : vector<256x128xf32> to vector<16x16x128xf32>
    %11 = arith.truncf %10 : vector<16x16x128xf32> to vector<16x16x128xbf16>
    %cst_8 = arith.constant 0.000000e+00 : bf16
    %12 = vector.broadcast %cst_8 : bf16 to vector<16x1x128xbf16>
    %13 = vector.extract_strided_slice %11 {offsets = [0, 0, 0], sizes = [16, 15, 128], strides = [1, 1, 1]} : vector<16x16x128xbf16> to vector<16x15x128xbf16>
    %14 = tpu.concatenate %12, %13 in 1 : vector<16x1x128xbf16>, vector<16x15x128xbf16> -> vector<16x16x128xbf16>
    %c0_9 = arith.constant 0 : index
    %c1 = arith.constant 1 : index
    %c0_10 = arith.constant 0 : index
    %c0_11 = arith.constant 0 : index
    %15 = vector.load %arg9[%c0_9, %c1, %c0_10, %c0_11] : memref<3x18x16x128xbf16, #tpu.memory_space<vmem>>, vector<1x16x16x128xbf16>
    %16 = vector.shape_cast %15 : vector<1x16x16x128xbf16> to vector<16x16x128xbf16>
    %17 = vector.shape_cast %14 : vector<16x16x128xbf16> to vector<1x16x16x128xbf16>
    tpu.vector_store %arg9[%c0_9, %c1, %c0_10, %c0_11], %17 {strides = array<i32>} : memref<3x18x16x128xbf16, #tpu.memory_space<vmem>>, vector<1x16x16x128xbf16>,
    %c1_12 = arith.constant 1 : index
    %c1_13 = arith.constant 1 : index
    %c0_14 = arith.constant 0 : index
    %c0_15 = arith.constant 0 : index
    %18 = vector.load %arg9[%c1_12, %c1_13, %c0_14, %c0_15] : memref<3x18x16x128xbf16, #tpu.memory_space<vmem>>, vector<1x16x16x128xbf16>
    %19 = vector.shape_cast %18 : vector<1x16x16x128xbf16> to vector<16x16x128xbf16>
    %20 = vector.shape_cast %11 : vector<16x16x128xbf16> to vector<1x16x16x128xbf16>
    tpu.vector_store %arg9[%c1_12, %c1_13, %c0_14, %c0_15], %20 {strides = array<i32>} : memref<3x18x16x128xbf16, #tpu.memory_space<vmem>>, vector<1x16x16x128xbf16>,
    %21 = vector.extract_strided_slice %11 {offsets = [0, 1, 0], sizes = [16, 15, 128], strides = [1, 1, 1]} : vector<16x16x128xbf16> to vector<16x15x128xbf16>
    %22 = tpu.concatenate %21, %12 in 1 : vector<16x15x128xbf16>, vector<16x1x128xbf16> -> vector<16x16x128xbf16>
    %c2 = arith.constant 2 : index
    %c1_16 = arith.constant 1 : index
    %c0_17 = arith.constant 0 : index
    %c0_18 = arith.constant 0 : index
    %23 = vector.load %arg9[%c2, %c1_16, %c0_17, %c0_18] : memref<3x18x16x128xbf16, #tpu.memory_space<vmem>>, vector<1x16x16x128xbf16>
    %24 = vector.shape_cast %23 : vector<1x16x16x128xbf16> to vector<16x16x128xbf16>
    %25 = vector.shape_cast %22 : vector<16x16x128xbf16> to vector<1x16x16x128xbf16>
    tpu.vector_store %arg9[%c2, %c1_16, %c0_17, %c0_18], %25 {strides = array<i32>} : memref<3x18x16x128xbf16, #tpu.memory_space<vmem>>, vector<1x16x16x128xbf16>,
    %cst_19 = arith.constant 0.000000e+00 : bf16
    %26 = vector.broadcast %cst_19 : bf16 to vector<16x128xbf16>
    %c0_20 = arith.constant 0 : index
    %c0_21 = arith.constant 0 : index
    %c0_22 = arith.constant 0 : index
    %c0_23 = arith.constant 0 : index
    %27 = vector.load %arg9[%c0_20, %c0_21, %c0_22, %c0_23] : memref<3x18x16x128xbf16, #tpu.memory_space<vmem>>, vector<1x1x16x128xbf16>
    %28 = vector.shape_cast %27 : vector<1x1x16x128xbf16> to vector<16x128xbf16>
    %29 = vector.shape_cast %26 : vector<16x128xbf16> to vector<1x1x16x128xbf16>
    tpu.vector_store %arg9[%c0_20, %c0_21, %c0_22, %c0_23], %29 {strides = array<i32>} : memref<3x18x16x128xbf16, #tpu.memory_space<vmem>>, vector<1x1x16x128xbf16>,
    %c0_24 = arith.constant 0 : index
    %c17 = arith.constant 17 : index
    %c0_25 = arith.constant 0 : index
    %c0_26 = arith.constant 0 : index
    %30 = vector.load %arg9[%c0_24, %c17, %c0_25, %c0_26] : memref<3x18x16x128xbf16, #tpu.memory_space<vmem>>, vector<1x1x16x128xbf16>
    %31 = vector.shape_cast %30 : vector<1x1x16x128xbf16> to vector<16x128xbf16>
    %32 = vector.shape_cast %26 : vector<16x128xbf16> to vector<1x1x16x128xbf16>
    tpu.vector_store %arg9[%c0_24, %c17, %c0_25, %c0_26], %32 {strides = array<i32>} : memref<3x18x16x128xbf16, #tpu.memory_space<vmem>>, vector<1x1x16x128xbf16>,
    %c1_27 = arith.constant 1 : index
    %c0_28 = arith.constant 0 : index
    %c0_29 = arith.constant 0 : index
    %c0_30 = arith.constant 0 : index
    %33 = vector.load %arg9[%c1_27, %c0_28, %c0_29, %c0_30] : memref<3x18x16x128xbf16, #tpu.memory_space<vmem>>, vector<1x1x16x128xbf16>
    %34 = vector.shape_cast %33 : vector<1x1x16x128xbf16> to vector<16x128xbf16>
    %35 = vector.shape_cast %26 : vector<16x128xbf16> to vector<1x1x16x128xbf16>
    tpu.vector_store %arg9[%c1_27, %c0_28, %c0_29, %c0_30], %35 {strides = array<i32>} : memref<3x18x16x128xbf16, #tpu.memory_space<vmem>>, vector<1x1x16x128xbf16>,
    %c1_31 = arith.constant 1 : index
    %c17_32 = arith.constant 17 : index
    %c0_33 = arith.constant 0 : index
    %c0_34 = arith.constant 0 : index
    %36 = vector.load %arg9[%c1_31, %c17_32, %c0_33, %c0_34] : memref<3x18x16x128xbf16, #tpu.memory_space<vmem>>, vector<1x1x16x128xbf16>
    %37 = vector.shape_cast %36 : vector<1x1x16x128xbf16> to vector<16x128xbf16>
    %38 = vector.shape_cast %26 : vector<16x128xbf16> to vector<1x1x16x128xbf16>
    tpu.vector_store %arg9[%c1_31, %c17_32, %c0_33, %c0_34], %38 {strides = array<i32>} : memref<3x18x16x128xbf16, #tpu.memory_space<vmem>>, vector<1x1x16x128xbf16>,
    %c2_35 = arith.constant 2 : index
    %c0_36 = arith.constant 0 : index
    %c0_37 = arith.constant 0 : index
    %c0_38 = arith.constant 0 : index
    %39 = vector.load %arg9[%c2_35, %c0_36, %c0_37, %c0_38] : memref<3x18x16x128xbf16, #tpu.memory_space<vmem>>, vector<1x1x16x128xbf16>
    %40 = vector.shape_cast %39 : vector<1x1x16x128xbf16> to vector<16x128xbf16>
    %41 = vector.shape_cast %26 : vector<16x128xbf16> to vector<1x1x16x128xbf16>
    tpu.vector_store %arg9[%c2_35, %c0_36, %c0_37, %c0_38], %41 {strides = array<i32>} : memref<3x18x16x128xbf16, #tpu.memory_space<vmem>>, vector<1x1x16x128xbf16>,
    %c2_39 = arith.constant 2 : index
    %c17_40 = arith.constant 17 : index
    %c0_41 = arith.constant 0 : index
    %c0_42 = arith.constant 0 : index
    %42 = vector.load %arg9[%c2_39, %c17_40, %c0_41, %c0_42] : memref<3x18x16x128xbf16, #tpu.memory_space<vmem>>, vector<1x1x16x128xbf16>
    %43 = vector.shape_cast %42 : vector<1x1x16x128xbf16> to vector<16x128xbf16>
    %44 = vector.shape_cast %26 : vector<16x128xbf16> to vector<1x1x16x128xbf16>
    tpu.vector_store %arg9[%c2_39, %c17_40, %c0_41, %c0_42], %44 {strides = array<i32>} : memref<3x18x16x128xbf16, #tpu.memory_space<vmem>>, vector<1x1x16x128xbf16>,
    %c1_43 = arith.constant 1 : index
    %c1_44 = arith.constant 1 : index
    %c0_45 = arith.constant 0 : index
    %c0_46 = arith.constant 0 : index
    %45 = vector.load %arg9[%c1_43, %c1_44, %c0_45, %c0_46] : memref<3x18x16x128xbf16, #tpu.memory_space<vmem>>, vector<1x16x16x128xbf16>
    %46 = vector.shape_cast %45 : vector<1x16x16x128xbf16> to vector<16x16x128xbf16>
    %47 = vector.shape_cast %46 : vector<16x16x128xbf16> to vector<256x128xbf16>
    %c1_47 = arith.constant 1 : index
    %c1_48 = arith.constant 1 : index
    %c0_49 = arith.constant 0 : index
    %c0_50 = arith.constant 0 : index
    %48 = vector.load %arg4[%c1_47, %c1_48, %c0_49, %c0_50] : memref<3x3x128x128xbf16, #tpu.memory_space<vmem>>, vector<1x1x128x128xbf16>
    %49 = vector.shape_cast %48 : vector<1x1x128x128xbf16> to vector<128x128xbf16>
    %cst_51 = arith.constant dense<0.000000e+00> : vector<256x128xf32>
    %50 = tpu.matmul %47, %49, %cst_51 {dimension_numbers = #tpu.dot_dimension_numbers<[1], [0], [0], [1], [0, 0, 1, 1], [], []>} : vector<256x128xbf16>, vector<128x128xbf16>, vector<256x128xf32> -> vector<256x128xf32>
    %c0_52 = arith.constant 0 : index
    %c0_53 = arith.constant 0 : index
    %c0_54 = arith.constant 0 : index
    %c0_55 = arith.constant 0 : index
    %51 = vector.load %arg9[%c0_52, %c0_53, %c0_54, %c0_55] : memref<3x18x16x128xbf16, #tpu.memory_space<vmem>>, vector<1x16x16x128xbf16>
    %52 = vector.shape_cast %51 : vector<1x16x16x128xbf16> to vector<16x16x128xbf16>
    %53 = vector.shape_cast %52 : vector<16x16x128xbf16> to vector<256x128xbf16>
    %c0_56 = arith.constant 0 : index
    %c0_57 = arith.constant 0 : index
    %c0_58 = arith.constant 0 : index
    %c0_59 = arith.constant 0 : index
    %54 = vector.load %arg4[%c0_56, %c0_57, %c0_58, %c0_59] : memref<3x3x128x128xbf16, #tpu.memory_space<vmem>>, vector<1x1x128x128xbf16>
    %55 = vector.shape_cast %54 : vector<1x1x128x128xbf16> to vector<128x128xbf16>
    %cst_60 = arith.constant dense<0.000000e+00> : vector<256x128xf32>
    %56 = tpu.matmul %53, %55, %cst_60 {dimension_numbers = #tpu.dot_dimension_numbers<[1], [0], [0], [1], [0, 0, 1, 1], [], []>} : vector<256x128xbf16>, vector<128x128xbf16>, vector<256x128xf32> -> vector<256x128xf32>
    %57 = arith.addf %50, %56 : vector<256x128xf32>
    %c1_61 = arith.constant 1 : index
    %c0_62 = arith.constant 0 : index
    %c0_63 = arith.constant 0 : index
    %c0_64 = arith.constant 0 : index
    %58 = vector.load %arg9[%c1_61, %c0_62, %c0_63, %c0_64] : memref<3x18x16x128xbf16, #tpu.memory_space<vmem>>, vector<1x16x16x128xbf16>
    %59 = vector.shape_cast %58 : vector<1x16x16x128xbf16> to vector<16x16x128xbf16>
    %60 = vector.shape_cast %59 : vector<16x16x128xbf16> to vector<256x128xbf16>
    %c0_65 = arith.constant 0 : index
    %c1_66 = arith.constant 1 : index
    %c0_67 = arith.constant 0 : index
    %c0_68 = arith.constant 0 : index
    %61 = vector.load %arg4[%c0_65, %c1_66, %c0_67, %c0_68] : memref<3x3x128x128xbf16, #tpu.memory_space<vmem>>, vector<1x1x128x128xbf16>
    %62 = vector.shape_cast %61 : vector<1x1x128x128xbf16> to vector<128x128xbf16>
    %cst_69 = arith.constant dense<0.000000e+00> : vector<256x128xf32>
    %63 = tpu.matmul %60, %62, %cst_69 {dimension_numbers = #tpu.dot_dimension_numbers<[1], [0], [0], [1], [0, 0, 1, 1], [], []>} : vector<256x128xbf16>, vector<128x128xbf16>, vector<256x128xf32> -> vector<256x128xf32>
    %64 = arith.addf %57, %63 : vector<256x128xf32>
    %c2_70 = arith.constant 2 : index
    %c0_71 = arith.constant 0 : index
    %c0_72 = arith.constant 0 : index
    %c0_73 = arith.constant 0 : index
    %65 = vector.load %arg9[%c2_70, %c0_71, %c0_72, %c0_73] : memref<3x18x16x128xbf16, #tpu.memory_space<vmem>>, vector<1x16x16x128xbf16>
    %66 = vector.shape_cast %65 : vector<1x16x16x128xbf16> to vector<16x16x128xbf16>
    %67 = vector.shape_cast %66 : vector<16x16x128xbf16> to vector<256x128xbf16>
    %c0_74 = arith.constant 0 : index
    %c2_75 = arith.constant 2 : index
    %c0_76 = arith.constant 0 : index
    %c0_77 = arith.constant 0 : index
    %68 = vector.load %arg4[%c0_74, %c2_75, %c0_76, %c0_77] : memref<3x3x128x128xbf16, #tpu.memory_space<vmem>>, vector<1x1x128x128xbf16>
    %69 = vector.shape_cast %68 : vector<1x1x128x128xbf16> to vector<128x128xbf16>
    %cst_78 = arith.constant dense<0.000000e+00> : vector<256x128xf32>
    %70 = tpu.matmul %67, %69, %cst_78 {dimension_numbers = #tpu.dot_dimension_numbers<[1], [0], [0], [1], [0, 0, 1, 1], [], []>} : vector<256x128xbf16>, vector<128x128xbf16>, vector<256x128xf32> -> vector<256x128xf32>
    %71 = arith.addf %64, %70 : vector<256x128xf32>
    %c0_79 = arith.constant 0 : index
    %c1_80 = arith.constant 1 : index
    %c0_81 = arith.constant 0 : index
    %c0_82 = arith.constant 0 : index
    %72 = vector.load %arg9[%c0_79, %c1_80, %c0_81, %c0_82] : memref<3x18x16x128xbf16, #tpu.memory_space<vmem>>, vector<1x16x16x128xbf16>
    %73 = vector.shape_cast %72 : vector<1x16x16x128xbf16> to vector<16x16x128xbf16>
    %74 = vector.shape_cast %73 : vector<16x16x128xbf16> to vector<256x128xbf16>
    %c1_83 = arith.constant 1 : index
    %c0_84 = arith.constant 0 : index
    %c0_85 = arith.constant 0 : index
    %c0_86 = arith.constant 0 : index
    %75 = vector.load %arg4[%c1_83, %c0_84, %c0_85, %c0_86] : memref<3x3x128x128xbf16, #tpu.memory_space<vmem>>, vector<1x1x128x128xbf16>
    %76 = vector.shape_cast %75 : vector<1x1x128x128xbf16> to vector<128x128xbf16>
    %cst_87 = arith.constant dense<0.000000e+00> : vector<256x128xf32>
    %77 = tpu.matmul %74, %76, %cst_87 {dimension_numbers = #tpu.dot_dimension_numbers<[1], [0], [0], [1], [0, 0, 1, 1], [], []>} : vector<256x128xbf16>, vector<128x128xbf16>, vector<256x128xf32> -> vector<256x128xf32>
    %78 = arith.addf %71, %77 : vector<256x128xf32>
    %c2_88 = arith.constant 2 : index
    %c1_89 = arith.constant 1 : index
    %c0_90 = arith.constant 0 : index
    %c0_91 = arith.constant 0 : index
    %79 = vector.load %arg9[%c2_88, %c1_89, %c0_90, %c0_91] : memref<3x18x16x128xbf16, #tpu.memory_space<vmem>>, vector<1x16x16x128xbf16>
    %80 = vector.shape_cast %79 : vector<1x16x16x128xbf16> to vector<16x16x128xbf16>
    %81 = vector.shape_cast %80 : vector<16x16x128xbf16> to vector<256x128xbf16>
    %c1_92 = arith.constant 1 : index
    %c2_93 = arith.constant 2 : index
    %c0_94 = arith.constant 0 : index
    %c0_95 = arith.constant 0 : index
    %82 = vector.load %arg4[%c1_92, %c2_93, %c0_94, %c0_95] : memref<3x3x128x128xbf16, #tpu.memory_space<vmem>>, vector<1x1x128x128xbf16>
    %83 = vector.shape_cast %82 : vector<1x1x128x128xbf16> to vector<128x128xbf16>
    %cst_96 = arith.constant dense<0.000000e+00> : vector<256x128xf32>
    %84 = tpu.matmul %81, %83, %cst_96 {dimension_numbers = #tpu.dot_dimension_numbers<[1], [0], [0], [1], [0, 0, 1, 1], [], []>} : vector<256x128xbf16>, vector<128x128xbf16>, vector<256x128xf32> -> vector<256x128xf32>
    %85 = arith.addf %78, %84 : vector<256x128xf32>
    %c0_97 = arith.constant 0 : index
    %c2_98 = arith.constant 2 : index
    %c0_99 = arith.constant 0 : index
    %c0_100 = arith.constant 0 : index
    %86 = vector.load %arg9[%c0_97, %c2_98, %c0_99, %c0_100] : memref<3x18x16x128xbf16, #tpu.memory_space<vmem>>, vector<1x16x16x128xbf16>
    %87 = vector.shape_cast %86 : vector<1x16x16x128xbf16> to vector<16x16x128xbf16>
    %88 = vector.shape_cast %87 : vector<16x16x128xbf16> to vector<256x128xbf16>
    %c2_101 = arith.constant 2 : index
    %c0_102 = arith.constant 0 : index
    %c0_103 = arith.constant 0 : index
    %c0_104 = arith.constant 0 : index
    %89 = vector.load %arg4[%c2_101, %c0_102, %c0_103, %c0_104] : memref<3x3x128x128xbf16, #tpu.memory_space<vmem>>, vector<1x1x128x128xbf16>
    %90 = vector.shape_cast %89 : vector<1x1x128x128xbf16> to vector<128x128xbf16>
    %cst_105 = arith.constant dense<0.000000e+00> : vector<256x128xf32>
    %91 = tpu.matmul %88, %90, %cst_105 {dimension_numbers = #tpu.dot_dimension_numbers<[1], [0], [0], [1], [0, 0, 1, 1], [], []>} : vector<256x128xbf16>, vector<128x128xbf16>, vector<256x128xf32> -> vector<256x128xf32>
    %92 = arith.addf %85, %91 : vector<256x128xf32>
    %c1_106 = arith.constant 1 : index
    %c2_107 = arith.constant 2 : index
    %c0_108 = arith.constant 0 : index
    %c0_109 = arith.constant 0 : index
    %93 = vector.load %arg9[%c1_106, %c2_107, %c0_108, %c0_109] : memref<3x18x16x128xbf16, #tpu.memory_space<vmem>>, vector<1x16x16x128xbf16>
    %94 = vector.shape_cast %93 : vector<1x16x16x128xbf16> to vector<16x16x128xbf16>
    %95 = vector.shape_cast %94 : vector<16x16x128xbf16> to vector<256x128xbf16>
    %c2_110 = arith.constant 2 : index
    %c1_111 = arith.constant 1 : index
    %c0_112 = arith.constant 0 : index
    %c0_113 = arith.constant 0 : index
    %96 = vector.load %arg4[%c2_110, %c1_111, %c0_112, %c0_113] : memref<3x3x128x128xbf16, #tpu.memory_space<vmem>>, vector<1x1x128x128xbf16>
    %97 = vector.shape_cast %96 : vector<1x1x128x128xbf16> to vector<128x128xbf16>
    %cst_114 = arith.constant dense<0.000000e+00> : vector<256x128xf32>
    %98 = tpu.matmul %95, %97, %cst_114 {dimension_numbers = #tpu.dot_dimension_numbers<[1], [0], [0], [1], [0, 0, 1, 1], [], []>} : vector<256x128xbf16>, vector<128x128xbf16>, vector<256x128xf32> -> vector<256x128xf32>
    %99 = arith.addf %92, %98 : vector<256x128xf32>
    %c2_115 = arith.constant 2 : index
    %c2_116 = arith.constant 2 : index
    %c0_117 = arith.constant 0 : index
    %c0_118 = arith.constant 0 : index
    %100 = vector.load %arg9[%c2_115, %c2_116, %c0_117, %c0_118] : memref<3x18x16x128xbf16, #tpu.memory_space<vmem>>, vector<1x16x16x128xbf16>
    %101 = vector.shape_cast %100 : vector<1x16x16x128xbf16> to vector<16x16x128xbf16>
    %102 = vector.shape_cast %101 : vector<16x16x128xbf16> to vector<256x128xbf16>
    %c2_119 = arith.constant 2 : index
    %c2_120 = arith.constant 2 : index
    %c0_121 = arith.constant 0 : index
    %c0_122 = arith.constant 0 : index
    %103 = vector.load %arg4[%c2_119, %c2_120, %c0_121, %c0_122] : memref<3x3x128x128xbf16, #tpu.memory_space<vmem>>, vector<1x1x128x128xbf16>
    %104 = vector.shape_cast %103 : vector<1x1x128x128xbf16> to vector<128x128xbf16>
    %cst_123 = arith.constant dense<0.000000e+00> : vector<256x128xf32>
    %105 = tpu.matmul %102, %104, %cst_123 {dimension_numbers = #tpu.dot_dimension_numbers<[1], [0], [0], [1], [0, 0, 1, 1], [], []>} : vector<256x128xbf16>, vector<128x128xbf16>, vector<256x128xf32> -> vector<256x128xf32>
    %106 = arith.addf %99, %105 : vector<256x128xf32>
    %c0_124 = arith.constant 0 : index
    %c0_125 = arith.constant 0 : index
    %107 = vector.load %arg5[%c0_124, %c0_125] : memref<1x128xf32, #tpu.memory_space<vmem>>, vector<1x128xf32>
    %108 = vector.broadcast %107 : vector<1x128xf32> to vector<256x128xf32>
    %109 = arith.addf %106, %108 : vector<256x128xf32>
    %cst_126 = arith.constant 0.000000e+00 : f32
    %110 = vector.broadcast %cst_126 : f32 to vector<256x128xf32>
    %111 = arith.maximumf %109, %110 : vector<256x128xf32>
    %112 = arith.truncf %111 : vector<256x128xf32> to vector<256x128xbf16>
    %c0_127 = arith.constant 0 : index
    %c0_128 = arith.constant 0 : index
    %113 = vector.load %arg6[%c0_127, %c0_128] : memref<128x128xbf16, #tpu.memory_space<vmem>>, vector<128x128xbf16>
    %cst_129 = arith.constant dense<0.000000e+00> : vector<256x128xf32>
    %114 = tpu.matmul %112, %113, %cst_129 {dimension_numbers = #tpu.dot_dimension_numbers<[1], [0], [0], [1], [0, 0, 1, 1], [], []>} : vector<256x128xbf16>, vector<128x128xbf16>, vector<256x128xf32> -> vector<256x128xf32>
    %c0_130 = arith.constant 0 : index
    %c0_131 = arith.constant 0 : index
    %115 = vector.load %arg7[%c0_130, %c0_131] : memref<1x128xf32, #tpu.memory_space<vmem>>, vector<1x128xf32>
    %116 = vector.broadcast %115 : vector<1x128xf32> to vector<256x128xf32>
    %117 = arith.addf %114, %116 : vector<256x128xf32>
    %c0_132 = arith.constant 0 : index
    %c0_133 = arith.constant 0 : index
    %c0_134 = arith.constant 0 : index
    %c0_135 = arith.constant 0 : index
    %118 = vector.load %arg1[%c0_132, %c0_133, %c0_134, %c0_135] : memref<1x16x16x128xbf16, #tpu.memory_space<vmem>>, vector<1x16x16x128xbf16>
    %119 = vector.shape_cast %118 : vector<1x16x16x128xbf16> to vector<16x16x128xbf16>
    %120 = vector.shape_cast %119 : vector<16x16x128xbf16> to vector<256x128xbf16>
    %121 = arith.extf %120 : vector<256x128xbf16> to vector<256x128xf32>
    %122 = arith.addf %117, %121 : vector<256x128xf32>
    %cst_136 = arith.constant 0.000000e+00 : f32
    %123 = vector.broadcast %cst_136 : f32 to vector<256x128xf32>
    %124 = arith.maximumf %122, %123 : vector<256x128xf32>
    %125 = vector.shape_cast %124 : vector<256x128xf32> to vector<16x16x128xf32>
    %c0_137 = arith.constant 0 : index
    %c0_138 = arith.constant 0 : index
    %c0_139 = arith.constant 0 : index
    %c0_140 = arith.constant 0 : index
    %126 = vector.load %arg8[%c0_137, %c0_138, %c0_139, %c0_140] : memref<1x16x16x128xf32, #tpu.memory_space<vmem>>, vector<1x16x16x128xf32>
    %127 = vector.shape_cast %126 : vector<1x16x16x128xf32> to vector<16x16x128xf32>
    %128 = vector.shape_cast %125 : vector<16x16x128xf32> to vector<1x16x16x128xf32>
    tpu.vector_store %arg8[%c0_137, %c0_138, %c0_139, %c0_140], %128 {strides = array<i32>} : memref<1x16x16x128xf32, #tpu.memory_space<vmem>>, vector<1x16x16x128xf32>,
    return
  }
  func.func @transform_0(%arg0: i32) -> (i32, i32, i32, i32) {
    %c0_i32 = arith.constant 0 : i32
    %c0_i32_0 = arith.constant 0 : i32
    %c0_i32_1 = arith.constant 0 : i32
    %c0_i32_2 = arith.constant 0 : i32
    return %arg0, %c0_i32, %c0_i32_0, %c0_i32_1 : i32, i32, i32, i32
  }
  func.func @transform_1(%arg0: i32) -> (i32, i32) {
    %c0_i32 = arith.constant 0 : i32
    %c0_i32_0 = arith.constant 0 : i32
    %c0_i32_1 = arith.constant 0 : i32
    return %c0_i32, %c0_i32_0 : i32, i32
  }
  func.func @transform_2(%arg0: i32) -> (i32, i32) {
    %c0_i32 = arith.constant 0 : i32
    %c0_i32_0 = arith.constant 0 : i32
    %c0_i32_1 = arith.constant 0 : i32
    return %c0_i32, %c0_i32_0 : i32, i32
  }
  func.func @transform_3(%arg0: i32) -> (i32, i32, i32, i32) {
    %c0_i32 = arith.constant 0 : i32
    %c0_i32_0 = arith.constant 0 : i32
    %c0_i32_1 = arith.constant 0 : i32
    %c0_i32_2 = arith.constant 0 : i32
    %c0_i32_3 = arith.constant 0 : i32
    return %c0_i32, %c0_i32_0, %c0_i32_1, %c0_i32_2 : i32, i32, i32, i32
  }
  func.func @transform_4(%arg0: i32) -> (i32, i32) {
    %c0_i32 = arith.constant 0 : i32
    %c0_i32_0 = arith.constant 0 : i32
    %c0_i32_1 = arith.constant 0 : i32
    return %c0_i32, %c0_i32_0 : i32, i32
  }
  func.func @transform_5(%arg0: i32) -> (i32, i32) {
    %c0_i32 = arith.constant 0 : i32
    %c0_i32_0 = arith.constant 0 : i32
    %c0_i32_1 = arith.constant 0 : i32
    return %c0_i32, %c0_i32_0 : i32, i32
  }
  func.func @transform_6(%arg0: i32) -> (i32, i32) {
    %c0_i32 = arith.constant 0 : i32
    %c0_i32_0 = arith.constant 0 : i32
    %c0_i32_1 = arith.constant 0 : i32
    return %c0_i32, %c0_i32_0 : i32, i32
  }
  func.func @transform_7(%arg0: i32) -> (i32, i32, i32, i32) {
    %c0_i32 = arith.constant 0 : i32
    %c0_i32_0 = arith.constant 0 : i32
    %c0_i32_1 = arith.constant 0 : i32
    %c0_i32_2 = arith.constant 0 : i32
    return %arg0, %c0_i32, %c0_i32_0, %c0_i32_1 : i32, i32, i32, i32
  }
}

</mosaic_0001>

<bundles_post_ra>
// kernel: tpu_custom_call.1
= control target key start
LH: loop header
LB: loop body
LE: loop exit
PB: predicated region body
PF: predicated region fallthrough
CT: control target
= control target key end

     0   :  { %12 = vsyncpa [#allocation4], 0  ;;  %s6646_s0 = inlined_call_operand.hbm [shape: bf16[2,16,16,128], index: 0, kind: input, shape index: {}]   ;;  %s6647_s1 = inlined_call_operand.hbm [shape: bf16[128,128], index: 1, kind: input, shape index: {}]   ;;  %s6648_s2 = inlined_call_operand.vmem [shape: f32[1,128], index: 2, kind: input, shape index: {}]   ;;  %s6649_s3 = inlined_call_operand.hbm [shape: bf16[3,3,128,128], index: 3, kind: input, shape index: {}]   ;;  %s6650_s4 = inlined_call_operand.vmem [shape: f32[1,128], index: 4, kind: input, shape index: {}]   ;;  %s6651_s5 = inlined_call_operand.hbm [shape: bf16[128,128], index: 5, kind: input, shape index: {}]   ;;  %s6652_s6 = inlined_call_operand.vmem [shape: f32[1,128], index: 6, kind: input, shape index: {}]   ;;  %s6653_s7 = inlined_call_operand.hbm [shape: f32[2,16,16,128], index: 7, kind: output, shape index: {}]  }
   0x1   :  { %14 = vsyncpa [#allocation4 + $0x1], 0 }
   0x2   :  { %15 = vsyncpa [#allocation7], 0 }
   0x3   :  { %16 = vsyncpa [#allocation10], 0 }
   0x4   :  { %17 = vsyncpa [#allocation5], 0 }
   0x5   :  { %19 = vsyncpa [#allocation5 + $0x1], 0  ;;  %s5723_s24 = smov 0   ;;  %s5725_s25 = smov 0  }
   0x6   :  { %s5727_s26 = smov 0   ;;  %s5729_s27 = smov 0  }
   0x7 LB: > { %s5744_s28 = sadd.s32 4294967295, %s5671_s27   ;;  %s4025_s29 = sadd.s32 4294967294, %s5671_s27   ;;  %s5671_s27 = sphi %s5729_s27, %s6732_s27   ;;  %s5667_s26 = sphi %s5727_s26, %s6731_s26   ;;  %s5663_s25 = sphi %s5725_s25, %s6730_s25   ;;  %s5659_s24 = sphi %s5723_s24, %s6729_s24  }
   0x8   : > { %p45_p0 = scmp.ne.s32.totalorder %s5663_s25, %s5659_s24  ;;  %p6654_p1 = scmp.eq.s32.totalorder %s5744_s28, 0 }
   0x9   : > { %p201_p3 = scmp.eq.s32.totalorder %s4025_s29, 1  ;;  %p4026_p5 = scmp.ge.s32.totalorder %s5671_s27, 1 }
   0xa   : > { %p5753_p4 = por %p6654_p1, %p45_p0  ;;  %p208_p7 = scmp.lt.s32.totalorder %s5671_s27, 3 }
   0xb   : > { %p5758_p6 = por %p201_p3, %p45_p0  ;;  %s5673_s10 = smov [#allocation6]  }
   0xc   : > { %s6682_s30 = scalar_select %p5753_p4, 1, 0 }
   0xd   : > { %s6683_s8 = scalar_select %p5758_p6, 1, 0 }
   0xe   : > { %p5763_p8 = pnand %p4026_p5, %p208_p7  ;;  %s220_s11 = sshll.u32 %s5673_s10, 4  ;;  %s5767_s11 = int_to_ptr.vmem [resolvable:$true] %s220_s11 }
   0xf   : > { %6684 = sst [smem:[#allocation16_spill]] %s6683_s8  ;;  %s5674_s13 = smov [#allocation8]  }
  0x10   : > { %s6685_s9 = scalar_select %p5763_p8, 1, 0 }
  0x11   : > { %p5313_p9 = pneg %p5763_p8  ;;  %s236_s14 = sshll.u32 %s5674_s13, 4  ;;  %s5778_s14 = int_to_ptr.vmem [resolvable:$true] %s236_s14 }
  0x12   : > { %s5675_s15 = smov [#allocation9]   ;;  %s5483_s19 = scalar_lea.hbm %s6647_s1, 1024 }
  0x13   : > { %p5774_p11 = pnand %p5313_p9, %p6654_p1  ;;  %s5780_s16 = sshll.u32 %s5675_s15, 4  ;;  %s253_s16 = int_to_ptr.vmem [resolvable:$true] %s5780_s16 }
  0x14   : > { %p5484_p12 = scmp.ne.s32.totalorder %s6647_s1, %s5483_s19  ;;  %p5490_p5 = scmp.lt.u32.totalorder %s5483_s19, %s6647_s1 }
  0x15   : > { %p5790_p13 = pneg %p5774_p11 }
  0x17   : > { %p5486_p0 = pnand %p5790_p13, %p5484_p12 }
  0x19   : > { %p5487_p3 = pneg %p5486_p0 }
  0x1b   : > { %p5492_p7 = pnand %p5490_p5, %p5487_p3 }
  0x1d   : > { %5495 = shalt.err (!%p5492_p7)
}
  0x1e   : > { %s5496_s10 = scalar_lea.vmem %s5767_s11, 1024  ;;  %p5504_p2 = scmp.lt.s32.totalorder %s5767_s11, %s5767_s11 }
  0x1f   : > { %p5497_p9 = scmp.ne.s32.totalorder %s5767_s11, %s5496_s10  ;;  %p5505_p6 = scmp.lt.s32.totalorder %s5496_s10, %s5496_s10 }
  0x21   : > { %p5499_p10 = pnand %p5497_p9, %p5790_p13  ;;  %p5506_p12 = por %p5505_p6, %p5504_p2 }
  0x23   : > { %p5500_p1 = pneg %p5499_p10 }
  0x25   : > { %p5507_p0 = pnand %p5506_p12, %p5500_p1 }
  0x27   : > { %5510 = shalt.err (!%p5507_p0)
}
  0x28   : > { %s5676_s13 = smov 64   ;;  %s5677_s15 = smov 4  }
  0x29   : > { %5316 = dma.hbm_to_vmem [thread:$0]  (!%p5774_p11), %s6647_s1, 1024, %s5767_s11, [#allocation7], %s5676_s13, %s5676_s13, %s5677_s15  }
  0x2a   : > { %s5511_s21 = scalar_lea.hbm %s6649_s3, 9216 }
  0x2b   : > { %p5512_p1 = scmp.ne.s32.totalorder %s6649_s3, %s5511_s21  ;;  %p5518_p10 = scmp.lt.u32.totalorder %s5511_s21, %s6649_s3 }
  0x2d   : > { %p5514_p2 = pnand %p5512_p1, %p5790_p13 }
  0x2f   : > { %p5515_p6 = pneg %p5514_p2 }
  0x31   : > { %p5520_p3 = pnand %p5518_p10, %p5515_p6 }
  0x33   : > { %5523 = shalt.err (!%p5520_p3)
}
  0x34   : > { %s5524_s11 = scalar_lea.vmem %s5778_s14, 9216  ;;  %p5532_p12 = scmp.lt.s32.totalorder %s5778_s14, %s5778_s14 }
  0x35   : > { %p5525_p5 = scmp.ne.s32.totalorder %s5778_s14, %s5524_s11  ;;  %p5533_p0 = scmp.lt.s32.totalorder %s5524_s11, %s5524_s11 }
  0x37   : > { %p5527_p7 = pnand %p5525_p5, %p5790_p13  ;;  %p5534_p1 = por %p5533_p0, %p5532_p12 }
  0x39   : > { %p5528_p9 = pneg %p5527_p7 }
  0x3b   : > { %p5535_p2 = pnand %p5534_p1, %p5528_p9 }
  0x3d   : > { %5538 = shalt.err (!%p5535_p2)
}
  0x3e   : > { %5319 = dma.hbm_to_vmem [thread:$0]  (!%p5774_p11), %s6649_s3, 9216, %s5778_s14, [#allocation7], %s5676_s13, %s5676_s13, %s5677_s15  }
  0x3f   : > { %s5539_s20 = scalar_lea.hbm %s6651_s5, 1024 }
  0x40   : > { %p5540_p6 = scmp.ne.s32.totalorder %s6651_s5, %s5539_s20  ;;  %p5546_p5 = scmp.lt.u32.totalorder %s5539_s20, %s6651_s5 }
  0x42   : > { %p5542_p10 = pnand %p5540_p6, %p5790_p13 }
  0x44   : > { %p5543_p3 = pneg %p5542_p10 }
  0x46   : > { %p5548_p7 = pnand %p5546_p5, %p5543_p3 }
  0x48   : > { %5551 = shalt.err (!%p5548_p7)
}
  0x49   : > { %s5552_s11 = scalar_lea.vmem %s253_s16, 1024  ;;  %p5560_p1 = scmp.lt.s32.totalorder %s253_s16, %s253_s16 }
  0x4a   : > { %p5553_p9 = scmp.ne.s32.totalorder %s253_s16, %s5552_s11  ;;  %p5561_p2 = scmp.lt.s32.totalorder %s5552_s11, %s5552_s11 }
  0x4c   : > { %p5555_p12 = pnand %p5553_p9, %p5790_p13  ;;  %p5562_p4 = por %p5561_p2, %p5560_p1 }
  0x4e   : > { %p5556_p0 = pneg %p5555_p12 }
  0x50   : > { %p5563_p8 = pnand %p5562_p4, %p5556_p0 }
  0x52   : > { %5566 = shalt.err (!%p5563_p8)
}
  0x53   : > { %5322 = dma.hbm_to_vmem [thread:$0]  (!%p5774_p11), %s6651_s5, 1024, %s253_s16, [#allocation10], %s5676_s13, %s5676_s13, %s5677_s15  }
  0x54   : > { %s5863_s22 = sadd.s32 1, %s5671_s27   ;;  %s32_s17 = sadd.s32 1, %s5667_s26 }
  0x55   : > { %s29_s12 = ssub.s32 %s5671_s27, %s5863_s22  ;;  %p39_p8 = scmp.ne.s32.totalorder %s5667_s26, %s5663_s25 }
  0x56   : > { %p30_p4 = scmp.eq.s32.totalorder %s29_s12, 0  ;;  %p40_p13 = scmp.eq.s32.totalorder %s5671_s27, 0 }
  0x57   : > { %p5334_p6 = scmp.lt.s32.totalorder %s5671_s27, 2  ;;  %p6688_p3 = scmp.eq.s32.totalorder %s5744_s28, 1 }
  0x58   : > { %s5873_s18 = scalar_select %p30_p4, %s5667_s26, %s32_s17  }
  0x59   : > { %p41_p10 = por %p40_p13, %p39_p8  ;;  %p5877_p5 = por %p6688_p3, %p39_p8 }
  0x5a   : > { %s269_s20 = sand.u32 1, %s5667_s26   ;;  %s4152_s21 = sshll.u32 %s5671_s27, 11 }
  0x5b   : > { %s4031_s16 = sshll.u32 %s269_s20, 7  ;;  %s5886_s10 = scalar_lea.hbm %s6646_s0, %s4152_s21 }
  0x5c   : > { %s273_s11 = scalar_lea.vmem [#allocation3], %s4031_s16  ;;  %p5888_p11 = pnand %p5334_p6, %p41_p10 }
  0x5d   : > { %s280_s14 = sshll.u32 %s273_s11, 4  ;;  %s5894_s12 = scalar_lea.sflag [#allocation4], %s269_s20  ;;  %s5892_s14 = int_to_ptr.vmem [resolvable:$true] %s280_s14 }
  0x5e   : > { %s5567_s17 = scalar_lea.hbm %s5886_s10, 2048  ;;  %p5569_p9 = pneg %p5888_p11 }
  0x5f   : > { %p5568_p7 = scmp.ne.s32.totalorder %s5886_s10, %s5567_s17  ;;  %s5572_s23 = scalar_lea.hbm %s6646_s0, 4096 }
  0x60   : > { %p5573_p1 = scmp.lt.u32.totalorder %s5886_s10, %s6646_s0  ;;  %p5574_p2 = scmp.lt.u32.totalorder %s5572_s23, %s5567_s17 }
  0x61   : > { %p5570_p12 = pnand %p5569_p9, %p5568_p7  ;;  %p5576_p8 = scmp.lt.u32.totalorder %s5567_s17, %s5886_s10 }
  0x62   : > { %p5575_p4 = por %p5574_p2, %p5573_p1 }
  0x63   : > { %p5571_p0 = pneg %p5570_p12 }
  0x64   : > { %p5577_p13 = por %p5576_p8, %p5575_p4 }
  0x66   : > { %p5578_p6 = pnand %p5577_p13, %p5571_p0 }
  0x68   : > { %5581 = shalt.err (!%p5578_p6)
}
  0x69   : > { %s5582_s20 = scalar_lea.vmem %s5892_s14, 2048  ;;  %s5678_s21 = smov [#allocation3]  }
  0x6a   : > { %p5583_p10 = scmp.ne.s32.totalorder %s5892_s14, %s5582_s20  ;;  %s5587_s16 = sshll.u32 %s5678_s21, 4  ;;  %s5588_s16 = int_to_ptr.vmem [resolvable:$false] %s5587_s16 }
  0x6b   : > { %s5589_s29 = scalar_lea.vmem %s5588_s16, 4096  ;;  %p5590_p12 = scmp.lt.s32.totalorder %s5892_s14, %s5588_s16 }
  0x6c   : > { %p5585_p3 = pnand %p5583_p10, %p5569_p9  ;;  %p5591_p1 = scmp.lt.s32.totalorder %s5589_s29, %s5582_s20 }
  0x6e   : > { %p5586_p7 = pneg %p5585_p3  ;;  %p5592_p2 = por %p5591_p1, %p5590_p12 }
  0x70   : > { %p5593_p4 = pnand %p5592_p2, %p5586_p7 }
  0x72   : > { %5596 = shalt.err (!%p5593_p4)
}
  0x73   : > { %5326 = dma.hbm_to_vmem [thread:$0]  (!%p5888_p11), %s5886_s10, 2048, %s5892_s14, %s5894_s12, %s5676_s13, %s5676_s13, %s5677_s15  }
  0x74   : > { %p6691_p9 = scmp.ne.s32.totalorder %s6685_s9, 0 }
  0x76   : > { %292 = sbr.rel (%p6691_p9) target bundleno = 1233 (0x4d1), region = 48 }
  0x7d   : > { %s5928_s17 = sand.u32 1, %s5663_s25   ;;  %p6692_p0 = scmp.ne.s32.totalorder %s6682_s30, 0 }
  0x7e   : > { %s4035_s23 = sshll.u32 %s5928_s17, 7  ;;  %s295_s11 = scalar_lea.sflag [#allocation4], %s5928_s17 }
  0x7f   : > { %s5932_s20 = scalar_lea.vmem [#allocation3], %s4035_s23 }
  0x80   : > { %5642 = dma.done.wait (%p6692_p0), %s295_s11, 2048  }
  0x81   : > { %5644 = vsyncadd (%p6692_p0), %s295_s11, 4294965248  ;;  %p6693_p11 = scmp.eq.s32.totalorder %s5744_s28, 0 }
  0x83   : > { %5646 = dma.done.wait (%p6693_p11), [#allocation7], 10240   ;;  %p6694_p8 = pmov %p6693_p11 }
  0x85   : > { %5648 = vsyncadd (%p6694_p8), [#allocation7], 4294957056  ;;  %p6695_p13 = pmov %p6694_p8 }
  0x86   : > { %p6696_p6 = pmov %p6694_p8 }
  0x87   : > { %5650 = dma.done.wait (%p6695_p13), [#allocation10], 1024  }
  0x88   : > { %5652 = vsyncadd (%p6696_p6), [#allocation10], 4294966272  ;;  %v5379_v0 = vld [vmem:[#allocation6] sm:$0xff]   ;;  %v5380_v1 = vld [vmem:[#allocation6 + $0x8] sm:$0xff]   ;;  %v6658_v33 = vmov 0   ;;  %vm878_vm0 = vcmask 1040384  }
  0x89   : > { %4497 = vmatprep.subr.bf16.mxu0 %v5379_v0  ;;  %v5381_v2 = vld [vmem:[#allocation6 + $0x10] sm:$0xff]   ;;  %v5382_v3 = vld [vmem:[#allocation6 + $0x18] sm:$0xff]   ;;  %v5387_v4 = vld [vmem:[%s5932_s20] sm:$0xff]   ;;  %vm979_vm1 = vcmask 1047552   ;;  %vm980_vm2 = vsmask.f32 7424 }
  0x8a   : > { %4498 = vmatpush3.bf16.msra.mxu0 %v5379_v0  ;;  %4513 = vmatprep.mubr.bf16.mxu0 %v5387_v4  ;;  %v5383_v5 = vld [vmem:[#allocation6 + $0x20] sm:$0xff]   ;;  %v5384_v6 = vld [vmem:[#allocation6 + $0x28] sm:$0xff]   ;;  %v5385_v7 = vld [vmem:[#allocation6 + $0x30] sm:$0xff]   ;;  %vm879_vm3 = vsmask.f32 256  ;;  %s4039_s8 = sshll.u32 %s5928_s17, 8 }
  0x8b   : > { %4499 = vmatprep.subr.bf16.mxu0 %v5380_v1  ;;  %v5386_v8 = vld [vmem:[#allocation6 + $0x38] sm:$0xff]   ;;  %v5403_v9 = vld [vmem:[#allocation8] sm:$0xff]   ;;  %v5388_v10 = vld [vmem:[%s5932_s20 + $0x8] sm:$0xff]   ;;  %s6521_s12 = scalar_lea.vmem [#allocation11], %s4039_s8  ;;  %s4153_s21 = sshll.u32 %s5744_s28, 12 }
  0x8c   : > { %v5389_v11 = vld [vmem:[%s5932_s20 + $0x10] sm:$0xff]   ;;  %v5404_v12 = vld [vmem:[#allocation8 + $0x8] sm:$0xff]   ;;  %v5390_v14 = vld [vmem:[%s5932_s20 + $0x18] sm:$0xff]   ;;  %s3923_s16 = sshll.u32 %s6521_s12, 4  ;;  %s6597_s11 = scalar_lea.hbm %s6653_s7, %s4153_s21  ;;  %s6599_s16 = int_to_ptr.vmem [resolvable:$true] %s3923_s16 }
  0x8d   : > { %v5405_v13 = vld [vmem:[#allocation8 + $0x10] sm:$0xff]   ;;  %v5391_v15 = vld [vmem:[%s5932_s20 + $0x20] sm:$0xff]   ;;  %v5406_v16 = vld [vmem:[#allocation8 + $0x18] sm:$0xff]   ;;  %s3910_s28 = scalar_lea.sflag [#allocation5], %s5928_s17  ;;  %s5680_s30 = smov [#allocation11]  }
  0x8e   : > { %4500 = vmatpush3.bf16.msra.mxu0 %v5380_v1  ;;  %v5392_v17 = vld [vmem:[%s5932_s20 + $0x28] sm:$0xff]   ;;  %v5393_v18 = vld [vmem:[%s5932_s20 + $0x30] sm:$0xff]   ;;  %v5394_v19 = vld [vmem:[%s5932_s20 + $0x38] sm:$0xff]   ;;  %s5601_s9 = sshll.u32 %s5680_s30, 4  ;;  %s5602_s9 = int_to_ptr.vmem [resolvable:$false] %s5601_s9 }
  0x8f   : > { %4501 = vmatprep.subr.bf16.mxu0 %v5381_v2  ;;  %v5395_v20 = vld [vmem:[%s5932_s20 + $0x40] sm:$0xff]   ;;  %v5396_v21 = vld [vmem:[%s5932_s20 + $0x48] sm:$0xff]   ;;  %v5397_v22 = vld [vmem:[%s5932_s20 + $0x50] sm:$0xff]   ;;  %s5603_s13 = scalar_lea.vmem %s5602_s9, 8192  ;;  %p5604_p12 = scmp.lt.s32.totalorder %s6599_s16, %s5602_s9 }
  0x90   : > { %v5398_v23 = vld [vmem:[%s5932_s20 + $0x58] sm:$0xff]   ;;  %v5399_v24 = vld [vmem:[%s5932_s20 + $0x60] sm:$0xff]   ;;  %v5400_v25 = vld [vmem:[%s5932_s20 + $0x68] sm:$0xff]  }
  0x91   : > { %v5401_v26 = vld [vmem:[%s5932_s20 + $0x70] sm:$0xff]   ;;  %v5402_v27 = vld [vmem:[%s5932_s20 + $0x78] sm:$0xff]   ;;  %v5407_v28 = vld [vmem:[#allocation8 + $0x20] sm:$0xff]  }
  0x92   : > { %4502 = vmatpush3.bf16.msra.mxu0 %v5381_v2  ;;  %v5408_v29 = vld [vmem:[#allocation8 + $0x28] sm:$0xff]   ;;  %v5409_v30 = vld [vmem:[#allocation8 + $0x30] sm:$0xff]   ;;  %v5410_v31 = vld [vmem:[#allocation8 + $0x38] sm:$0xff]  }
  0x93   : > { %4503 = vmatprep.subr.bf16.mxu0 %v5382_v3  ;;  %v5962_v32 = vld [vmem:[#allocation8 + $0x80] sm:$0xff]   ;;  %v5967_v34 = vld [vmem:[#allocation8 + $0x88] sm:$0xff]   ;;  %v5971_v35 = vld [vmem:[#allocation8 + $0x90] sm:$0xff]  }
  0x94   : > { %5025 = vmatprep.subr.bf16.mxu1 %v5962_v32  ;;  %v5975_v36 = vld [vmem:[#allocation8 + $0x98] sm:$0xff]   ;;  %v5979_v37 = vld [vmem:[#allocation8 + $0xa0] sm:$0xff]   ;;  %v5983_v38 = vld [vmem:[#allocation8 + $0xa8] sm:$0xff]  }
  0x95   : > { %5033 = vmatpush3.bf16.msra.mxu1 %v5962_v32  ;;  %6697 = vst [vmem:[#allocation17_spill] sm:$0xff] %v5975_v36  ;;  %6698 = vst [vmem:[#allocation18_spill] sm:$0xff] %v5979_v37  ;;  %v5987_v39 = vld [vmem:[#allocation8 + $0xb0] sm:$0xff]   ;;  %v5991_v40 = vld [vmem:[#allocation8 + $0xb8] sm:$0xff]  }
  0x96   : > { %4504 = vmatpush3.bf16.msra.mxu0 %v5382_v3  ;;  %5026 = vmatprep.subr.bf16.mxu1 %v5967_v34  ;;  %6699 = vst [vmem:[#allocation19_spill] sm:$0xff] %v5983_v38  ;;  %6700 = vst [vmem:[#allocation20_spill] sm:$0xff] %v5987_v39  ;;  %v5995_v41 = vld [vmem:[#allocation8 + $0xc0] sm:$0xff]  }
  0x97   : > { %4505 = vmatprep.subr.bf16.mxu0 %v5383_v5  ;;  %6701 = vst [vmem:[#allocation21_spill] sm:$0xff] %v5991_v40  ;;  %v5997_v42 = vld [vmem:[#allocation8 + $0x100] sm:$0xff]   ;;  %vm6023_vm4 = vmand %vm979_vm1, %vm980_vm2 }
  0x98   : > { %v6004_v43 = vld [vmem:[%s6648_s2] ss:$0 sm:$0xff]  ;;  %vm6028_vm5 = vmand %vm878_vm0, %vm879_vm3 }
  0x99   : > { %5034 = vmatpush3.bf16.msra.mxu1 %v5967_v34 }
  0x9a   : > { %4506 = vmatpush3.bf16.msra.mxu0 %v5383_v5  ;;  %5027 = vmatprep.subr.bf16.mxu1 %v5971_v35 }
  0x9b   : > { %4507 = vmatprep.subr.bf16.mxu0 %v5384_v6 }
  0x9d   : > { %5035 = vmatpush3.bf16.msra.mxu1 %v5971_v35 }
  0x9e   : > { %4508 = vmatpush3.bf16.msra.mxu0 %v5384_v6  ;;  %5028 = vmatprep.subr.bf16.mxu1 %v5975_v36 }
  0x9f   : > { %4509 = vmatprep.subr.bf16.mxu0 %v5385_v7 }
  0xa1   : > { %5036 = vmatpush3.bf16.msra.mxu1 %v5975_v36 }
  0xa2   : > { %4510 = vmatpush3.bf16.msra.mxu0 %v5385_v7  ;;  %5029 = vmatprep.subr.bf16.mxu1 %v5979_v37 }
  0xa3   : > { %4511 = vmatprep.subr.bf16.mxu0 %v5386_v8 }
  0xa5   : > { %5037 = vmatpush3.bf16.msra.mxu1 %v5979_v37 }
  0xa6   : > { %4512 = vmatpush3.bf16.msra.mxu0 %v5386_v8  ;;  %5030 = vmatprep.subr.bf16.mxu1 %v5983_v38 }
  0xa7   : > { %4545 = vmatprep.subr.bf16.mxu0 %v5403_v9 }
  0xa9   : > { %4514 = vmatmul.mubr.bf16.vlgmr.msra.gmra.mrb[0].mxu0 %v5388_v10  ;;  %5038 = vmatpush3.bf16.msra.mxu1 %v5983_v38 }
  0xaa   : > { %4517 = vmatprep.mubr.bf16.mxu0 %v5389_v11  ;;  %4546 = vmatpush3.bf16.msra.mxu0 %v5403_v9  ;;  %v5441_v9 = vld [vmem:[#allocation8 + $0x48] sm:$0xff]  }
  0xab   : > { %4547 = vmatprep.subr.bf16.mxu0 %v5404_v12  ;;  %5031 = vmatprep.subr.bf16.mxu1 %v5987_v39 }
  0xad   : > { %5039 = vmatpush3.bf16.msra.mxu1 %v5987_v39 }
  0xae   : > { %4548 = vmatpush3.bf16.msra.mxu0 %v5404_v12  ;;  %5032 = vmatprep.subr.bf16.mxu1 %v5991_v40 }
  0xaf   : > { %4549 = vmatprep.subr.bf16.mxu0 %v5405_v13 }
  0xb1   : > { %4518 = vmatmul.mubr.bf16.gmra.mrb[4].mxu0 %v5390_v14  ;;  %5040 = vmatpush3.bf16.msra.mxu1 %v5991_v40 }
  0xb2   : > { %4521 = vmatprep.mubr.bf16.mxu0 %v5391_v15  ;;  %4550 = vmatpush3.bf16.msra.mxu0 %v5405_v13  ;;  %v5453_v13 = vld [vmem:[#allocation8 + $0x190] sm:$0xff]  }
  0xb3   : > { %4551 = vmatprep.subr.bf16.mxu0 %v5406_v16  ;;  %4737 = vmatprep.subr.bf16.mxu1 %v5995_v41 }
  0xb6   : > { %4552 = vmatpush3.bf16.msra.mxu0 %v5406_v16 }
  0xb7   : > { %4553 = vmatprep.subr.bf16.mxu0 %v5407_v28 }
  0xb9   : > { %4522 = vmatmul.mubr.bf16.gmra.mrb[8].mxu0 %v5392_v17 }
  0xba   : > { %4525 = vmatprep.mubr.bf16.mxu0 %v5393_v18  ;;  %4554 = vmatpush3.bf16.msra.mxu0 %v5407_v28 }
  0xbb   : > { %4555 = vmatprep.subr.bf16.mxu0 %v5408_v29 }
  0xbe   : > { %4556 = vmatpush3.bf16.msra.mxu0 %v5408_v29 }
  0xbf   : > { %4557 = vmatprep.subr.bf16.mxu0 %v5409_v30 }
  0xc1   : > { %4526 = vmatmul.mubr.bf16.gmra.mrb[12].mxu0 %v5394_v19 }
  0xc2   : > { %4529 = vmatprep.mubr.bf16.mxu0 %v5395_v20  ;;  %4558 = vmatpush3.bf16.msra.mxu0 %v5409_v30 }
  0xc3   : > { %4559 = vmatprep.subr.bf16.mxu0 %v5410_v31 }
  0xc6   : > { %4560 = vmatpush3.bf16.msra.mxu0 %v5410_v31 }
  0xc7   : > { %4593 = vmatprep.subr.bf16.mxu0 %v5997_v42 }
  0xc9   : > { %4530 = vmatmul.mubr.bf16.gmra.mrb[16].mxu0 %v5396_v21  ;;  %v5422_v21 = vld [vmem:[#allocation8 + $0x108] sm:$0xff]  }
  0xca   : > { %4533 = vmatprep.mubr.bf16.mxu0 %v5397_v22 }
  0xd1   : > { %4534 = vmatmul.mubr.bf16.gmra.mrb[20].mxu0 %v5398_v23 }
  0xd2   : > { %4537 = vmatprep.mubr.bf16.mxu0 %v5399_v24 }
  0xd9   : > { %4538 = vmatmul.mubr.bf16.gmra.mrb[24].mxu0 %v5400_v25 }
  0xda   : > { %4541 = vmatprep.mubr.bf16.mxu0 %v5401_v26 }
  0xe1   : > { %4542 = vmatmul.mubr.bf16.gmra.mrb[28].mxu0 %v5402_v27 }
  0xe2   : > { %4561 = vmatprep.mubr.bf16.mxu0 %v6658_v33 }
 0x17c   : > { %v4515_v44 = vpop.f32.mrb[0].mxu0 }
 0x17d   : > { %v584_v45 = vadd.f32 %v4515_v44, %v6004_v43  ;;  %v575_v46 = vpop.f32.mrb[1].mxu0 }
 0x17e   : > { %v576_v47 = vadd.f32 %v6004_v43, %v575_v46  ;;  %v4516_v48 = vpop.f32.mrb[2].mxu0 }
 0x17f   : > { %v587_v49 = vadd.f32 %v4516_v48, %v6004_v43  ;;  %v578_v50 = vpop.f32.mrb[3].mxu0  ;;  %v704_v52 = vmax.f32 %v584_v45, 0.0 }
 0x180   : > { %v579_v51 = vadd.f32 %v6004_v43, %v578_v50  ;;  %v702_v54 = vmax.f32 %v576_v47, 0.0 }
 0x181   : > { %v705_v53 = vmax.f32 %v587_v49, 0.0 }
 0x182   : > { %v703_v55 = vmax.f32 %v579_v51, 0.0  ;;  %v5424_v51 = vld [vmem:[#allocation8 + $0x110] sm:$0xff]  }
 0x183   : > { %v6010_v56 = vpack.c.bf16 %v705_v53, %v704_v52 }
 0x184   : > { %v6012_v57 = vpack.c.bf16 %v703_v55, %v702_v54  ;;  %v4519_v58 = vpop.f32.mrb[4].mxu0 }
 0x185   : > { %v600_v59 = vadd.f32 %v4519_v58, %v6004_v43  ;;  %v591_v60 = vpop.f32.mrb[5].mxu0  ;;  %v758_v61 = vshrl.u32 %v6010_v56, 16  ;;  %v761_v62 = vshll.u32 %v6010_v56, 16 }
 0x186   : > { %v751_v63 = vshrl.u32 %v6012_v57, 16  ;;  %v592_v0 = vadd.f32 %v6004_v43, %v591_v60  ;;  %v4520_v1 = vpop.f32.mrb[6].mxu0  ;;  %v754_v2 = vshll.u32 %v6012_v57, 16 }
 0x187   : > { %v603_v3 = vadd.f32 %v4520_v1, %v6004_v43  ;;  %v594_v4 = vpop.f32.mrb[7].mxu0  ;;  %v760_v5 = vrot.slane %v758_v61, 7  ;;  %v933_v6 = vrot.slane %v761_v62, 1  ;;  %v708_v11 = vmax.f32 %v600_v59, 0.0 }
 0x188   : > { %v595_v7 = vadd.f32 %v6004_v43, %v594_v4  ;;  %v753_v8 = vrot.slane %v751_v63, 7  ;;  %v931_v10 = vrot.slane %v754_v2, 1  ;;  %v706_v16 = vmax.f32 %v592_v0, 0.0 }
 0x189   : > { %v709_v12 = vmax.f32 %v603_v3, 0.0  ;;  %v763_v14 = vor.u32 %v761_v62, %v760_v5  ;;  %v934_v15 = vor.u32 %v933_v6, %v758_v61 }
 0x18a   : > { %v707_v17 = vmax.f32 %v595_v7, 0.0  ;;  %v756_v18 = vor.u32 %v754_v2, %v753_v8  ;;  %v932_v19 = vor.u32 %v931_v10, %v751_v63  ;;  %v5426_v2 = vld [vmem:[#allocation8 + $0x118] sm:$0xff]  }
 0x18b   : > { %v6032_v20 = vpack.c.bf16 %v709_v12, %v708_v11  ;;  %v6036_v22 = vsel %vm6023_vm4, %v934_v15, 0  ;;  %v6052_v29 = vsel %vm6028_vm5, 0, %v763_v14 }
 0x18c   : > { %v6038_v23 = vpack.c.bf16 %v707_v17, %v706_v16  ;;  %v4523_v24 = vpop.f32.mrb[8].mxu0  ;;  %v6042_v25 = vsel %vm6028_vm5, 0, %v756_v18  ;;  %v6046_v26 = vsel %vm6023_vm4, %v932_v19, 0 }
 0x18d   : > { %v616_v27 = vadd.f32 %v4523_v24, %v6004_v43  ;;  %v607_v28 = vpop.f32.mrb[9].mxu0  ;;  %4562 = vmatmul.mubr.bf16.vlgmr.msra.gmra.mrb[32].mxu0 %v6042_v25  ;;  %v772_v30 = vshrl.u32 %v6032_v20, 16  ;;  %v775_v31 = vshll.u32 %v6032_v20, 16 }
 0x18e   : > { %v608_v44 = vadd.f32 %v6004_v43, %v607_v28  ;;  %v4524_v45 = vpop.f32.mrb[10].mxu0  ;;  %4565 = vmatprep.mubr.bf16.mxu0 %v6052_v29  ;;  %v765_v46 = vshrl.u32 %v6038_v23, 16  ;;  %v768_v47 = vshll.u32 %v6038_v23, 16  ;;  %4594 = vmatpush3.bf16.msra.mxu0 %v5997_v42 }
 0x18f   : > { %v619_v48 = vadd.f32 %v4524_v45, %v6004_v43  ;;  %v610_v49 = vpop.f32.mrb[11].mxu0  ;;  %v774_v50 = vrot.slane %v772_v30, 7  ;;  %4595 = vmatprep.subr.bf16.mxu0 %v5422_v21  ;;  %v937_v52 = vrot.slane %v775_v31, 1  ;;  %v712_v58 = vmax.f32 %v616_v27, 0.0  ;;  %v5428_v27 = vld [vmem:[#allocation8 + $0x120] sm:$0xff]  }
 0x190   : > { %v611_v53 = vadd.f32 %v6004_v43, %v610_v49  ;;  %v767_v54 = vrot.slane %v765_v46, 7  ;;  %v935_v55 = vrot.slane %v768_v47, 1  ;;  %v710_v62 = vmax.f32 %v608_v44, 0.0 }
 0x191   : > { %v713_v59 = vmax.f32 %v619_v48, 0.0  ;;  %v777_v60 = vor.u32 %v775_v31, %v774_v50  ;;  %v938_v61 = vor.u32 %v937_v52, %v772_v30 }
 0x192   : > { %v711_v63 = vmax.f32 %v611_v53, 0.0  ;;  %v770_v0 = vor.u32 %v768_v47, %v767_v54  ;;  %4596 = vmatpush3.bf16.msra.mxu0 %v5422_v21  ;;  %v936_v42 = vor.u32 %v935_v55, %v765_v46  ;;  %v5430_v54 = vld [vmem:[#allocation8 + $0x128] sm:$0xff]  }
 0x193   : > { %v6063_v1 = vpack.c.bf16 %v713_v59, %v712_v58  ;;  %4597 = vmatprep.subr.bf16.mxu0 %v5424_v51  ;;  %v6067_v3 = vsel %vm6023_vm4, %v938_v61, 0  ;;  %v6083_v11 = vsel %vm6028_vm5, 0, %v777_v60 }
 0x194   : > { %v6069_v4 = vpack.c.bf16 %v711_v63, %v710_v62  ;;  %v4527_v5 = vpop.f32.mrb[12].mxu0  ;;  %v6073_v6 = vsel %vm6028_vm5, 0, %v770_v0  ;;  %v6077_v7 = vsel %vm6023_vm4, %v936_v42, 0 }
 0x195   : > { %v632_v8 = vadd.f32 %v4527_v5, %v6004_v43  ;;  %v623_v10 = vpop.f32.mrb[13].mxu0  ;;  %4566 = vmatmul.mubr.bf16.gmra.mrb[36].mxu0 %v6073_v6  ;;  %v786_v12 = vshrl.u32 %v6063_v1, 16  ;;  %v789_v14 = vshll.u32 %v6063_v1, 16 }
 0x196   : > { %v624_v15 = vadd.f32 %v6004_v43, %v623_v10  ;;  %v4528_v16 = vpop.f32.mrb[14].mxu0  ;;  %4569 = vmatprep.mubr.bf16.mxu0 %v6083_v11  ;;  %v779_v17 = vshrl.u32 %v6069_v4, 16  ;;  %v782_v18 = vshll.u32 %v6069_v4, 16  ;;  %4598 = vmatpush3.bf16.msra.mxu0 %v5424_v51 }
 0x197   : > { %v635_v19 = vadd.f32 %v4528_v16, %v6004_v43  ;;  %v626_v21 = vpop.f32.mrb[15].mxu0  ;;  %v788_v24 = vrot.slane %v786_v12, 7  ;;  %4599 = vmatprep.subr.bf16.mxu0 %v5426_v2  ;;  %v941_v28 = vrot.slane %v789_v14, 1  ;;  %v716_v45 = vmax.f32 %v632_v8, 0.0 }
 0x198   : > { %v627_v30 = vadd.f32 %v6004_v43, %v626_v21  ;;  %v781_v31 = vrot.slane %v779_v17, 7  ;;  %v939_v44 = vrot.slane %v782_v18, 1  ;;  %v714_v49 = vmax.f32 %v624_v15, 0.0 }
 0x199   : > { %v717_v46 = vmax.f32 %v635_v19, 0.0  ;;  %v791_v47 = vor.u32 %v789_v14, %v788_v24  ;;  %v942_v48 = vor.u32 %v941_v28, %v786_v12 }
 0x19a   : > { %v715_v50 = vmax.f32 %v627_v30, 0.0  ;;  %v784_v52 = vor.u32 %v782_v18, %v781_v31  ;;  %4600 = vmatpush3.bf16.msra.mxu0 %v5426_v2  ;;  %v940_v51 = vor.u32 %v939_v44, %v779_v17  ;;  %v5432_v18 = vld [vmem:[#allocation8 + $0x130] sm:$0xff]  }
 0x19b   : > { %v6093_v53 = vpack.c.bf16 %v717_v46, %v716_v45  ;;  %4601 = vmatprep.subr.bf16.mxu0 %v5428_v27  ;;  %v6097_v55 = vsel %vm6023_vm4, %v942_v48, 0  ;;  %v6113_v0 = vsel %vm6028_vm5, 0, %v791_v47 }
 0x19c   : > { %6706 = vst [vmem:[#allocation22_spill] sm:$0xff] %v6097_v55  ;;  %v6099_v58 = vpack.c.bf16 %v715_v50, %v714_v49  ;;  %v4531_v59 = vpop.f32.mrb[16].mxu0  ;;  %v6103_v60 = vsel %vm6028_vm5, 0, %v784_v52  ;;  %v6107_v61 = vsel %vm6023_vm4, %v940_v51, 0  ;;  %v5434_v50 = vld [vmem:[#allocation8 + $0x138] sm:$0xff]  }
 0x19d   : > { %v648_v62 = vadd.f32 %v4531_v59, %v6004_v43  ;;  %v639_v63 = vpop.f32.mrb[17].mxu0  ;;  %4570 = vmatmul.mubr.bf16.gmra.mrb[40].mxu0 %v6103_v60  ;;  %v800_v42 = vshrl.u32 %v6093_v53, 16  ;;  %v803_v2 = vshll.u32 %v6093_v53, 16 }
 0x19e   : > { %v640_v5 = vadd.f32 %v6004_v43, %v639_v63  ;;  %v4532_v8 = vpop.f32.mrb[18].mxu0  ;;  %4573 = vmatprep.mubr.bf16.mxu0 %v6113_v0  ;;  %v793_v10 = vshrl.u32 %v6099_v58, 16  ;;  %v796_v12 = vshll.u32 %v6099_v58, 16  ;;  %4602 = vmatpush3.bf16.msra.mxu0 %v5428_v27 }
 0x19f   : > { %v651_v14 = vadd.f32 %v4532_v8, %v6004_v43  ;;  %v642_v15 = vpop.f32.mrb[19].mxu0  ;;  %v945_v16 = vrot.slane %v803_v2, 1  ;;  %v802_v17 = vrot.slane %v800_v42, 7  ;;  %4603 = vmatprep.subr.bf16.mxu0 %v5430_v54  ;;  %v720_v28 = vmax.f32 %v648_v62, 0.0 }
 0x1a0   : > { %v643_v19 = vadd.f32 %v6004_v43, %v642_v15  ;;  %v795_v21 = vrot.slane %v793_v10, 7  ;;  %v943_v24 = vrot.slane %v796_v12, 1  ;;  %v718_v45 = vmax.f32 %v640_v5, 0.0 }
 0x1a1   : > { %v721_v30 = vmax.f32 %v651_v14, 0.0  ;;  %v946_v31 = vor.u32 %v945_v16, %v800_v42  ;;  %v805_v44 = vor.u32 %v803_v2, %v802_v17 }
 0x1a2   : > { %v719_v46 = vmax.f32 %v643_v19, 0.0  ;;  %v798_v47 = vor.u32 %v796_v12, %v795_v21  ;;  %4604 = vmatpush3.bf16.msra.mxu0 %v5430_v54  ;;  %v944_v27 = vor.u32 %v943_v24, %v793_v10  ;;  %v6153_v21 = vld [vmem:[#allocation8 + $0x40] sm:$0xff]  }
 0x1a3   : > { %v6123_v48 = vpack.c.bf16 %v721_v30, %v720_v28  ;;  %v6127_v49 = vsel %vm6023_vm4, %v946_v31, 0  ;;  %4605 = vmatprep.subr.bf16.mxu0 %v5432_v18  ;;  %v6144_v42 = vsel %vm6028_vm5, 0, %v805_v44 }
 0x1a4   : > { %6707 = vst [vmem:[#allocation23_spill] sm:$0xff] %v6127_v49  ;;  %v6129_v52 = vpack.c.bf16 %v719_v46, %v718_v45  ;;  %v4535_v51 = vpop.f32.mrb[20].mxu0  ;;  %4721 = vmatprep.mubr.bf16.mxu1 %v6127_v49  ;;  %v6134_v59 = vsel %vm6028_vm5, 0, %v798_v47  ;;  %v6138_v54 = vsel %vm6023_vm4, %v944_v27, 0 }
 0x1a5   : > { %6708 = vst [vmem:[#allocation24_spill] sm:$0xff] %v6138_v54  ;;  %v664_v62 = vadd.f32 %v4535_v51, %v6004_v43  ;;  %v655_v63 = vpop.f32.mrb[21].mxu0  ;;  %4574 = vmatmul.mubr.bf16.gmra.mrb[44].mxu0 %v6134_v59  ;;  %v814_v2 = vshrl.u32 %v6123_v48, 16  ;;  %v817_v5 = vshll.u32 %v6123_v48, 16 }
 0x1a6   : > { %v656_v8 = vadd.f32 %v6004_v43, %v655_v63  ;;  %v4536_v10 = vpop.f32.mrb[22].mxu0  ;;  %4577 = vmatprep.mubr.bf16.mxu0 %v6144_v42  ;;  %v807_v12 = vshrl.u32 %v6129_v52, 16  ;;  %v810_v14 = vshll.u32 %v6129_v52, 16  ;;  %4606 = vmatpush3.bf16.msra.mxu0 %v5432_v18 }
 0x1a7   : > { %v667_v15 = vadd.f32 %v4536_v10, %v6004_v43  ;;  %v658_v16 = vpop.f32.mrb[23].mxu0  ;;  %v816_v17 = vrot.slane %v814_v2, 7  ;;  %v949_v19 = vrot.slane %v817_v5, 1  ;;  %4607 = vmatprep.subr.bf16.mxu0 %v5434_v50  ;;  %v724_v31 = vmax.f32 %v664_v62, 0.0  ;;  %v5421_v10 = vld [vmem:[#allocation8 + $0xc8] sm:$0xff]  }
 0x1a8   : > { %v659_v24 = vadd.f32 %v6004_v43, %v658_v16  ;;  %v809_v28 = vrot.slane %v807_v12, 7  ;;  %v947_v30 = vrot.slane %v810_v14, 1  ;;  %v722_v44 = vmax.f32 %v656_v8, 0.0 }
 0x1a9   : > { %v725_v45 = vmax.f32 %v667_v15, 0.0  ;;  %v819_v46 = vor.u32 %v817_v5, %v816_v17  ;;  %v950_v18 = vor.u32 %v949_v19, %v814_v2 }
 0x1aa   : > { %v723_v47 = vmax.f32 %v659_v24, 0.0  ;;  %v812_v27 = vor.u32 %v810_v14, %v809_v28  ;;  %v948_v51 = vor.u32 %v947_v30, %v807_v12  ;;  %4608 = vmatpush3.bf16.msra.mxu0 %v5434_v50  ;;  %v5423_v30 = vld [vmem:[#allocation8 + $0xd0] sm:$0xff]  }
 0x1ab   : > { %v6156_v63 = vpack.c.bf16 %v725_v45, %v724_v31  ;;  %4641 = vmatprep.subr.bf16.mxu0 %v6153_v21  ;;  %v6174_v50 = vsel %vm6028_vm5, 0, %v819_v46 }
 0x1ac   : > { %v6159_v33 = vpack.c.bf16 %v723_v47, %v722_v44  ;;  %v4539_v40 = vpop.f32.mrb[24].mxu0  ;;  %v6163_v16 = vsel %vm6028_vm5, 0, %v812_v27  ;;  %v6167_v62 = vsel %vm6023_vm4, %v948_v51, 0 }
 0x1ad   : > { %6709 = vst [vmem:[#allocation25_spill] sm:$0xff] %v6167_v62  ;;  %v680_v5 = vadd.f32 %v4539_v40, %v6004_v43  ;;  %v671_v2 = vpop.f32.mrb[25].mxu0  ;;  %4578 = vmatmul.mubr.bf16.gmra.mrb[48].mxu0 %v6163_v16  ;;  %4722 = vmatmul.mubr.bf16.vlgmr.msra.gmra.mrb[0].mxu1 %v6167_v62  ;;  %v828_v8 = vshrl.u32 %v6156_v63, 16  ;;  %v831_v12 = vshll.u32 %v6156_v63, 16  ;;  %v6183_v40 = vsel %vm6023_vm4, %v950_v18, 0 }
 0x1ae   : > { %v672_v14 = vadd.f32 %v6004_v43, %v671_v2  ;;  %4738 = vmatpush3.bf16.msra.mxu1 %v5995_v41  ;;  %v4540_v15 = vpop.f32.mrb[26].mxu0  ;;  %4581 = vmatprep.mubr.bf16.mxu0 %v6174_v50  ;;  %6710 = vst [vmem:[#allocation26_spill] sm:$0xff] %v6183_v40  ;;  %v821_v17 = vshrl.u32 %v6159_v33, 16  ;;  %v824_v19 = vshll.u32 %v6159_v33, 16 }
 0x1af   : > { %v683_v24 = vadd.f32 %v4540_v15, %v6004_v43  ;;  %4725 = vmatprep.mubr.bf16.mxu1 %v6183_v40  ;;  %v674_v28 = vpop.f32.mrb[27].mxu0  ;;  %4739 = vmatprep.subr.bf16.mxu1 %v5421_v10  ;;  %v830_v31 = vrot.slane %v828_v8, 7  ;;  %v953_v41 = vrot.slane %v831_v12, 1  ;;  %v728_v47 = vmax.f32 %v680_v5, 0.0  ;;  %v5425_v40 = vld [vmem:[#allocation8 + $0xd8] sm:$0xff]  }
 0x1b0   : > { %v675_v44 = vadd.f32 %v6004_v43, %v674_v28  ;;  %v823_v45 = vrot.slane %v821_v17, 7  ;;  %v951_v46 = vrot.slane %v824_v19, 1  ;;  %v726_v27 = vmax.f32 %v672_v14, 0.0 }
 0x1b1   : > { %v729_v51 = vmax.f32 %v683_v24, 0.0  ;;  %v833_v18 = vor.u32 %v831_v12, %v830_v31  ;;  %v954_v15 = vor.u32 %v953_v41, %v828_v8 }
 0x1b2   : > { %v727_v2 = vmax.f32 %v675_v44, 0.0  ;;  %4740 = vmatpush3.bf16.msra.mxu1 %v5421_v10  ;;  %v826_v39 = vor.u32 %v824_v19, %v823_v45  ;;  %v952_v62 = vor.u32 %v951_v46, %v821_v17  ;;  %v5427_v44 = vld [vmem:[#allocation8 + $0xe0] sm:$0xff]  }
 0x1b3   : > { %v6190_v49 = vpack.c.bf16 %v729_v51, %v728_v47  ;;  %4741 = vmatprep.subr.bf16.mxu1 %v5423_v30  ;;  %v6207_v8 = vsel %vm6028_vm5, 0, %v833_v18 }
 0x1b4   : > { %v6192_v38 = vpack.c.bf16 %v727_v2, %v726_v27  ;;  %v4543_v37 = vpop.f32.mrb[28].mxu0  ;;  %v6196_v28 = vsel %vm6028_vm5, 0, %v826_v39  ;;  %v6200_v5 = vsel %vm6023_vm4, %v952_v62, 0 }
 0x1b5   : > { %6711 = vst [vmem:[#allocation27_spill] sm:$0xff] %v6200_v5  ;;  %v696_v10 = vadd.f32 %v4543_v37, %v6004_v43  ;;  %v687_v12 = vpop.f32.mrb[29].mxu0  ;;  %4582 = vmatmul.mubr.bf16.gmra.mrb[52].mxu0 %v6196_v28  ;;  %4726 = vmatmul.mubr.bf16.gmra.mrb[4].mxu1 %v6200_v5  ;;  %v842_v14 = vshrl.u32 %v6190_v49, 16  ;;  %v845_v39 = vshll.u32 %v6190_v49, 16  ;;  %v6215_v37 = vsel %vm6023_vm4, %v954_v15, 0 }
 0x1b6   : > { %v688_v17 = vadd.f32 %v6004_v43, %v687_v12  ;;  %4742 = vmatpush3.bf16.msra.mxu1 %v5423_v30  ;;  %v4544_v62 = vpop.f32.mrb[30].mxu0  ;;  %4585 = vmatprep.mubr.bf16.mxu0 %v6207_v8  ;;  %6712 = vst [vmem:[#allocation28_spill] sm:$0xff] %v6215_v37  ;;  %v835_v19 = vshrl.u32 %v6192_v38, 16  ;;  %v838_v24 = vshll.u32 %v6192_v38, 16 }
 0x1b7   : > { %v699_v31 = vadd.f32 %v4544_v62, %v6004_v43  ;;  %4729 = vmatprep.mubr.bf16.mxu1 %v6215_v37  ;;  %v690_v41 = vpop.f32.mrb[31].mxu0  ;;  %4743 = vmatprep.subr.bf16.mxu1 %v5425_v40  ;;  %v844_v45 = vrot.slane %v842_v14, 7  ;;  %v957_v30 = vrot.slane %v845_v39, 1  ;;  %v732_v51 = vmax.f32 %v696_v10, 0.0  ;;  %v5429_v37 = vld [vmem:[#allocation8 + $0xe8] sm:$0xff]  }
 0x1b8   : > { %v691_v46 = vadd.f32 %v6004_v43, %v690_v41  ;;  %v837_v47 = vrot.slane %v835_v19, 7  ;;  %v955_v27 = vrot.slane %v838_v24, 1  ;;  %v730_v18 = vmax.f32 %v688_v17, 0.0  ;;  %v5431_v17 = vld [vmem:[#allocation8 + $0xf0] sm:$0xff]  }
 0x1b9   : > { %v733_v2 = vmax.f32 %v699_v31, 0.0  ;;  %v847_v15 = vor.u32 %v845_v39, %v844_v45  ;;  %v958_v62 = vor.u32 %v957_v30, %v842_v14 }
 0x1ba   : > { %v731_v12 = vmax.f32 %v691_v46, 0.0  ;;  %4744 = vmatpush3.bf16.msra.mxu1 %v5425_v40  ;;  %v840_v5 = vor.u32 %v838_v24, %v837_v47  ;;  %v956_v54 = vor.u32 %v955_v27, %v835_v19  ;;  %v5433_v46 = vld [vmem:[#allocation8 + $0xf8] sm:$0xff]  }
 0x1bb   : > { %v6222_v55 = vpack.c.bf16 %v733_v2, %v732_v51  ;;  %4745 = vmatprep.subr.bf16.mxu1 %v5427_v44  ;;  %v6238_v40 = vsel %vm6028_vm5, 0, %v847_v15  ;;  %v5437_v2 = vld [vmem:[#allocation8 + $0x150] sm:$0xff]   ;;  %v5438_v15 = vld [vmem:[#allocation8 + $0x158] sm:$0xff]  }
 0x1bc   : > { %v6224_v36 = vpack.c.bf16 %v731_v12, %v730_v18  ;;  %v6228_v43 = vsel %vm6028_vm5, 0, %v840_v5  ;;  %v6232_v10 = vsel %vm6023_vm4, %v956_v54, 0  ;;  %v6244_v5 = vsel %vm6023_vm4, %v958_v62, 0  ;;  %v5436_v18 = vld [vmem:[#allocation8 + $0x148] sm:$0xff]   ;;  %v5444_v12 = vld [vmem:[#allocation8 + $0x58] sm:$0xff]   ;;  %v5439_v62 = vld [vmem:[#allocation8 + $0x160] sm:$0xff]  }
 0x1bd   : > { %4586 = vmatmul.mubr.bf16.gmra.mrb[56].mxu0 %v6228_v43  ;;  %4730 = vmatmul.mubr.bf16.gmra.mrb[8].mxu1 %v6232_v10  ;;  %v859_v14 = vshll.u32 %v6222_v55, 16  ;;  %v856_v19 = vshrl.u32 %v6222_v55, 16 }
 0x1be   : > { %4746 = vmatpush3.bf16.msra.mxu1 %v5427_v44  ;;  %4589 = vmatprep.mubr.bf16.mxu0 %v6238_v40  ;;  %v849_v54 = vshrl.u32 %v6224_v36, 16  ;;  %v852_v39 = vshll.u32 %v6224_v36, 16 }
 0x1bf   : > { %4733 = vmatprep.mubr.bf16.mxu1 %v6244_v5  ;;  %4747 = vmatprep.subr.bf16.mxu1 %v5429_v37  ;;  %v961_v24 = vrot.slane %v859_v14, 1 }
 0x1c0   : > { %v851_v31 = vrot.slane %v849_v54, 7  ;;  %v959_v41 = vrot.slane %v852_v39, 1 }
 0x1c1   : > { %v962_v44 = vor.u32 %v961_v24, %v856_v19  ;;  %v5449_v24 = vld [vmem:[#allocation8 + $0x70] sm:$0xff]  }
 0x1c2   : > { %4748 = vmatpush3.bf16.msra.mxu1 %v5429_v37  ;;  %v854_v45 = vor.u32 %v852_v39, %v851_v31  ;;  %v960_v30 = vor.u32 %v959_v41, %v849_v54  ;;  %v5435_v37 = vld [vmem:[#allocation8 + $0x140] sm:$0xff]   ;;  %v5442_v54 = vld [vmem:[#allocation8 + $0x168] sm:$0xff]   ;;  %v5448_v31 = vld [vmem:[#allocation8 + $0x178] sm:$0xff]  }
 0x1c3   : > { %4749 = vmatprep.subr.bf16.mxu1 %v5431_v17  ;;  %v6256_v47 = vsel %vm6023_vm4, %v962_v44, 0  ;;  %v5447_v39 = vld [vmem:[#allocation8 + $0x68] sm:$0xff]   ;;  %v5450_v41 = vld [vmem:[#allocation8 + $0x78] sm:$0xff]   ;;  %v5451_v44 = vld [vmem:[#allocation8 + $0x180] sm:$0xff]  }
 0x1c4   : > { %v6260_v27 = vsel %vm6028_vm5, 0, %v854_v45  ;;  %v6264_v51 = vsel %vm6023_vm4, %v960_v30, 0  ;;  %v858_v45 = vrot.slane %v856_v19, 7  ;;  %v6713_v19 = vmov 0  }
 0x1c5   : > { %4590 = vmatmul.mubr.bf16.gmra.mrb[60].mxu0 %v6260_v27  ;;  %4734 = vmatmul.mubr.bf16.gmra.mrb[12].mxu1 %v6264_v51 }
 0x1c6   : > { %4750 = vmatpush3.bf16.msra.mxu1 %v5431_v17  ;;  %4609 = vmatprep.mubr.bf16.mxu0 %v6012_v57  ;;  %v5445_v17 = vld [vmem:[#allocation8 + $0x170] sm:$0xff]   ;;  %v861_v30 = vor.u32 %v859_v14, %v858_v45  ;;  %v5454_v14 = vld [vmem:[#allocation8 + $0x198] sm:$0xff]  }
 0x1c7   : > { %4753 = vmatprep.mubr.bf16.mxu1 %v6042_v25  ;;  %4751 = vmatprep.subr.bf16.mxu1 %v5433_v46  ;;  %v5443_v25 = vld [vmem:[#allocation8 + $0x50] sm:$0xff]   ;;  %v5462_v45 = vld [vmem:[#allocation8 + $0x1d8] sm:$0xff]  }
 0x1ca   : > { %4752 = vmatpush3.bf16.msra.mxu1 %v5433_v46  ;;  %v6306_v46 = vsel %vm6028_vm5, 0, %v861_v30  ;;  %v5481_v30 = vld [vmem:[#allocation9 + $0x30] sm:$0xff]  }
 0x1cb   : > { %4785 = vmatprep.subr.bf16.mxu1 %v5435_v37 }
 0x1cd   : > { %4610 = vmatmul.mubr.bf16.vlgmr.msra.gmra.mrb[32].mxu0 %v6010_v56  ;;  %4754 = vmatmul.mubr.bf16.vlgmr.msra.gmra.mrb[16].mxu1 %v6052_v29 }
 0x1ce   : > { %4786 = vmatpush3.bf16.msra.mxu1 %v5435_v37  ;;  %4613 = vmatprep.mubr.bf16.mxu0 %v6038_v23  ;;  %v5452_v37 = vld [vmem:[#allocation8 + $0x188] sm:$0xff]  }
 0x1cf   : > { %4757 = vmatprep.mubr.bf16.mxu1 %v6073_v6  ;;  %4787 = vmatprep.subr.bf16.mxu1 %v5436_v18 }
 0x1d0   : > { %4642 = vmatpush3.bf16.msra.mxu0 %v6153_v21  ;;  %v5446_v21 = vld [vmem:[#allocation8 + $0x60] sm:$0xff]  }
 0x1d1   : > { %4643 = vmatprep.subr.bf16.mxu0 %v5441_v9 }
 0x1d2   : > { %4788 = vmatpush3.bf16.msra.mxu1 %v5436_v18  ;;  %v6715_v18 = vld [vmem:[#allocation22_spill] sm:$0xff] }
 0x1d3   : > { %4789 = vmatprep.subr.bf16.mxu1 %v5437_v2 }
 0x1d4   : > { %4644 = vmatpush3.bf16.msra.mxu0 %v5441_v9  ;;  %v6716_v9 = vld [vmem:[#allocation24_spill] sm:$0xff] }
 0x1d5   : > { %4614 = vmatmul.mubr.bf16.gmra.mrb[36].mxu0 %v6032_v20  ;;  %4758 = vmatmul.mubr.bf16.gmra.mrb[20].mxu1 %v6083_v11 }
 0x1d6   : > { %4617 = vmatprep.mubr.bf16.mxu0 %v6069_v4  ;;  %4761 = vmatprep.mubr.bf16.mxu1 %v6103_v60 }
 0x1d7   : > { %4790 = vmatpush3.bf16.msra.mxu1 %v5437_v2  ;;  %4645 = vmatprep.subr.bf16.mxu0 %v5443_v25  ;;  %v6717_v2 = vld [vmem:[#allocation18_spill] sm:$0xff] }
 0x1d8   : > { %4791 = vmatprep.subr.bf16.mxu1 %v5438_v15  ;;  %4646 = vmatpush3.bf16.msra.mxu0 %v5443_v25  ;;  %v6718_v25 = vld [vmem:[#allocation19_spill] sm:$0xff] }
 0x1d9   : > { %4647 = vmatprep.subr.bf16.mxu0 %v5444_v12 }
 0x1db   : > { %4792 = vmatpush3.bf16.msra.mxu1 %v5438_v15  ;;  %v5458_v15 = vld [vmem:[#allocation8 + $0x1b8] sm:$0xff]  }
 0x1dc   : > { %4793 = vmatprep.subr.bf16.mxu1 %v5439_v62  ;;  %4648 = vmatpush3.bf16.msra.mxu0 %v5444_v12  ;;  %v6719_v12 = vld [vmem:[#allocation23_spill] sm:$0xff] }
 0x1dd   : > { %4618 = vmatmul.mubr.bf16.gmra.mrb[40].mxu0 %v6063_v1  ;;  %4762 = vmatmul.mubr.bf16.gmra.mrb[24].mxu1 %v6113_v0 }
 0x1de   : > { %4621 = vmatprep.mubr.bf16.mxu0 %v6099_v58  ;;  %4765 = vmatprep.mubr.bf16.mxu1 %v6134_v59 }
 0x1df   : > { %4794 = vmatpush3.bf16.msra.mxu1 %v5439_v62  ;;  %4649 = vmatprep.subr.bf16.mxu0 %v5446_v21  ;;  %v6720_v62 = vld [vmem:[#allocation25_spill] sm:$0xff] }
 0x1e0   : > { %4795 = vmatprep.subr.bf16.mxu1 %v5442_v54  ;;  %4650 = vmatpush3.bf16.msra.mxu0 %v5446_v21  ;;  %v6721_v21 = vld [vmem:[#allocation20_spill] sm:$0xff] }
 0x1e1   : > { %4651 = vmatprep.subr.bf16.mxu0 %v5447_v39 }
 0x1e3   : > { %4796 = vmatpush3.bf16.msra.mxu1 %v5442_v54  ;;  %v5459_v54 = vld [vmem:[#allocation8 + $0x1c0] sm:$0xff]  }
 0x1e4   : > { %4797 = vmatprep.subr.bf16.mxu1 %v5445_v17  ;;  %4652 = vmatpush3.bf16.msra.mxu0 %v5447_v39  ;;  %v6722_v39 = vld [vmem:[#allocation21_spill] sm:$0xff] }
 0x1e5   : > { %4622 = vmatmul.mubr.bf16.gmra.mrb[44].mxu0 %v6093_v53  ;;  %4766 = vmatmul.mubr.bf16.gmra.mrb[28].mxu1 %v6144_v42 }
 0x1e6   : > { %4625 = vmatprep.mubr.bf16.mxu0 %v6129_v52  ;;  %4769 = vmatprep.mubr.bf16.mxu1 %v6163_v16 }
 0x1e7   : > { %4798 = vmatpush3.bf16.msra.mxu1 %v5445_v17  ;;  %4653 = vmatprep.subr.bf16.mxu0 %v5449_v24  ;;  %v6723_v17 = vld [vmem:[#allocation26_spill] sm:$0xff] }
 0x1e8   : > { %4799 = vmatprep.subr.bf16.mxu1 %v5448_v31  ;;  %4654 = vmatpush3.bf16.msra.mxu0 %v5449_v24  ;;  %v6724_v24 = vld [vmem:[#allocation27_spill] sm:$0xff] }
 0x1e9   : > { %4655 = vmatprep.subr.bf16.mxu0 %v5450_v41 }
 0x1eb   : > { %4800 = vmatpush3.bf16.msra.mxu1 %v5448_v31  ;;  %v6725_v31 = vld [vmem:[#allocation28_spill] sm:$0xff] }
 0x1ec   : > { %4656 = vmatpush3.bf16.msra.mxu0 %v5450_v41  ;;  %4833 = vmatprep.subr.bf16.mxu1 %v5451_v44  ;;  %v5460_v41 = vld [vmem:[#allocation8 + $0x1c8] sm:$0xff]  }
 0x1ed   : > { %4626 = vmatmul.mubr.bf16.gmra.mrb[48].mxu0 %v6123_v48  ;;  %4770 = vmatmul.mubr.bf16.gmra.mrb[0].mxu1 %v6174_v50 }
 0x1ee   : > { %4629 = vmatprep.mubr.bf16.mxu0 %v6159_v33  ;;  %4773 = vmatprep.mubr.bf16.mxu1 %v6196_v28 }
 0x1ef   : > { %4689 = vmatprep.subr.bf16.mxu0 %v5962_v32 }
 0x1f5   : > { %4630 = vmatmul.mubr.bf16.gmra.mrb[52].mxu0 %v6156_v63  ;;  %4774 = vmatmul.mubr.bf16.gmra.mrb[4].mxu1 %v6207_v8 }
 0x1f6   : > { %4633 = vmatprep.mubr.bf16.mxu0 %v6192_v38  ;;  %4777 = vmatprep.mubr.bf16.mxu1 %v6228_v43 }
 0x1fd   : > { %4634 = vmatmul.mubr.bf16.gmra.mrb[56].mxu0 %v6190_v49  ;;  %4778 = vmatmul.mubr.bf16.gmra.mrb[8].mxu1 %v6238_v40 }
 0x1fe   : > { %4637 = vmatprep.mubr.bf16.mxu0 %v6224_v36  ;;  %4781 = vmatprep.mubr.bf16.mxu1 %v6260_v27 }
 0x205   : > { %4638 = vmatmul.mubr.bf16.gmra.mrb[60].mxu0 %v6222_v55  ;;  %4782 = vmatmul.mubr.bf16.gmra.mrb[12].mxu1 %v6306_v46 }
 0x206   : > { %4801 = vmatprep.mubr.bf16.mxu1 %v6046_v26  ;;  %4657 = vmatprep.mubr.bf16.mxu0 %v6713_v19 }
 0x20d   : > { %4658 = vmatmul.mubr.bf16.vlgmr.msra.gmra.mrb[32].mxu0 %v6012_v57  ;;  %4802 = vmatmul.mubr.bf16.vlgmr.msra.gmra.mrb[16].mxu1 %v6036_v22  ;;  %v6714_v57 = vld [vmem:[#allocation17_spill] sm:$0xff] }
 0x20e   : > { %4834 = vmatpush3.bf16.msra.mxu1 %v5451_v44  ;;  %4661 = vmatprep.mubr.bf16.mxu0 %v6010_v56  ;;  %v5461_v44 = vld [vmem:[#allocation8 + $0x1d0] sm:$0xff]  }
 0x20f   : > { %4805 = vmatprep.mubr.bf16.mxu1 %v6077_v7  ;;  %4835 = vmatprep.subr.bf16.mxu1 %v5452_v37 }
 0x210   : > { %4690 = vmatpush3.bf16.msra.mxu0 %v5962_v32  ;;  %v5455_v32 = vld [vmem:[#allocation8 + $0x1a0] sm:$0xff]  }
 0x211   : > { %4691 = vmatprep.subr.bf16.mxu0 %v5967_v34 }
 0x212   : > { %4836 = vmatpush3.bf16.msra.mxu1 %v5452_v37 }
 0x213   : > { %4837 = vmatprep.subr.bf16.mxu1 %v5453_v13 }
 0x214   : > { %4692 = vmatpush3.bf16.msra.mxu0 %v5967_v34  ;;  %v5456_v34 = vld [vmem:[#allocation8 + $0x1a8] sm:$0xff]  }
 0x215   : > { %4662 = vmatmul.mubr.bf16.gmra.mrb[36].mxu0 %v6038_v23  ;;  %4806 = vmatmul.mubr.bf16.gmra.mrb[20].mxu1 %v6067_v3 }
 0x216   : > { %4665 = vmatprep.mubr.bf16.mxu0 %v6032_v20  ;;  %4809 = vmatprep.mubr.bf16.mxu1 %v6107_v61 }
 0x217   : > { %4838 = vmatpush3.bf16.msra.mxu1 %v5453_v13  ;;  %4693 = vmatprep.subr.bf16.mxu0 %v5971_v35 }
 0x218   : > { %4839 = vmatprep.subr.bf16.mxu1 %v5454_v14  ;;  %4694 = vmatpush3.bf16.msra.mxu0 %v5971_v35  ;;  %v5457_v35 = vld [vmem:[#allocation8 + $0x1b0] sm:$0xff]  }
 0x219   : > { %4695 = vmatprep.subr.bf16.mxu0 %v6714_v57 }
 0x21b   : > { %4840 = vmatpush3.bf16.msra.mxu1 %v5454_v14 }
 0x21c   : > { %4841 = vmatprep.subr.bf16.mxu1 %v5455_v32  ;;  %4696 = vmatpush3.bf16.msra.mxu0 %v6714_v57 }
 0x21d   : > { %4666 = vmatmul.mubr.bf16.gmra.mrb[40].mxu0 %v6069_v4  ;;  %4810 = vmatmul.mubr.bf16.gmra.mrb[24].mxu1 %v6715_v18 }
 0x21e   : > { %4669 = vmatprep.mubr.bf16.mxu0 %v6063_v1  ;;  %4813 = vmatprep.mubr.bf16.mxu1 %v6716_v9 }
 0x21f   : > { %4842 = vmatpush3.bf16.msra.mxu1 %v5455_v32  ;;  %4697 = vmatprep.subr.bf16.mxu0 %v6717_v2 }
 0x220   : > { %4843 = vmatprep.subr.bf16.mxu1 %v5456_v34  ;;  %4698 = vmatpush3.bf16.msra.mxu0 %v6717_v2 }
 0x221   : > { %4699 = vmatprep.subr.bf16.mxu0 %v6718_v25 }
 0x223   : > { %4844 = vmatpush3.bf16.msra.mxu1 %v5456_v34 }
 0x224   : > { %4845 = vmatprep.subr.bf16.mxu1 %v5457_v35  ;;  %4700 = vmatpush3.bf16.msra.mxu0 %v6718_v25 }
 0x225   : > { %4670 = vmatmul.mubr.bf16.gmra.mrb[44].mxu0 %v6099_v58  ;;  %4814 = vmatmul.mubr.bf16.gmra.mrb[28].mxu1 %v6719_v12 }
 0x226   : > { %4673 = vmatprep.mubr.bf16.mxu0 %v6093_v53  ;;  %4817 = vmatprep.mubr.bf16.mxu1 %v6720_v62 }
 0x227   : > { %4846 = vmatpush3.bf16.msra.mxu1 %v5457_v35  ;;  %4701 = vmatprep.subr.bf16.mxu0 %v6721_v21 }
 0x228   : > { %4847 = vmatprep.subr.bf16.mxu1 %v5458_v15  ;;  %4702 = vmatpush3.bf16.msra.mxu0 %v6721_v21 }
 0x229   : > { %4703 = vmatprep.subr.bf16.mxu0 %v6722_v39 }
 0x22b   : > { %4848 = vmatpush3.bf16.msra.mxu1 %v5458_v15 }
 0x22c   : > { %4704 = vmatpush3.bf16.msra.mxu0 %v6722_v39  ;;  %4881 = vmatprep.subr.bf16.mxu1 %v5459_v54 }
 0x22d   : > { %4674 = vmatmul.mubr.bf16.gmra.mrb[48].mxu0 %v6129_v52  ;;  %4818 = vmatmul.mubr.bf16.gmra.mrb[0].mxu1 %v6723_v17 }
 0x22e   : > { %4677 = vmatprep.mubr.bf16.mxu0 %v6123_v48  ;;  %4821 = vmatprep.mubr.bf16.mxu1 %v6724_v24 }
 0x235   : > { %4678 = vmatmul.mubr.bf16.gmra.mrb[52].mxu0 %v6159_v33  ;;  %4822 = vmatmul.mubr.bf16.gmra.mrb[4].mxu1 %v6725_v31 }
 0x236   : > { %4681 = vmatprep.mubr.bf16.mxu0 %v6156_v63  ;;  %4825 = vmatprep.mubr.bf16.mxu1 %v6232_v10 }
 0x23d   : > { %4682 = vmatmul.mubr.bf16.gmra.mrb[56].mxu0 %v6192_v38  ;;  %4826 = vmatmul.mubr.bf16.gmra.mrb[8].mxu1 %v6244_v5 }
 0x23e   : > { %4685 = vmatprep.mubr.bf16.mxu0 %v6190_v49  ;;  %4829 = vmatprep.mubr.bf16.mxu1 %v6264_v51 }
 0x245   : > { %4686 = vmatmul.mubr.bf16.gmra.mrb[60].mxu0 %v6224_v36  ;;  %4830 = vmatmul.mubr.bf16.gmra.mrb[12].mxu1 %v6256_v47 }
 0x246   : > { %4849 = vmatprep.mubr.bf16.mxu1 %v6052_v29  ;;  %4705 = vmatprep.mubr.bf16.mxu0 %v6713_v19  ;;  %v5464_v29 = vld [vmem:[#allocation8 + $0x1e8] sm:$0xff]  }
 0x24d   : > { %4706 = vmatmul.mubr.bf16.vlgmr.msra.gmra.mrb[32].mxu0 %v6046_v26  ;;  %4850 = vmatmul.mubr.bf16.vlgmr.msra.gmra.mrb[16].mxu1 %v6073_v6  ;;  %v5463_v26 = vld [vmem:[#allocation8 + $0x1e0] sm:$0xff]   ;;  %v5465_v6 = vld [vmem:[#allocation8 + $0x1f0] sm:$0xff]  }
 0x24e   : > { %4882 = vmatpush3.bf16.msra.mxu1 %v5459_v54  ;;  %4709 = vmatprep.mubr.bf16.mxu0 %v6036_v22 }
 0x24f   : > { %4853 = vmatprep.mubr.bf16.mxu1 %v6083_v11  ;;  %4883 = vmatprep.subr.bf16.mxu1 %v5460_v41  ;;  %v5466_v11 = vld [vmem:[#allocation8 + $0x1f8] sm:$0xff]  }
 0x252   : > { %4884 = vmatpush3.bf16.msra.mxu1 %v5460_v41 }
 0x253   : > { %4885 = vmatprep.subr.bf16.mxu1 %v5461_v44 }
 0x255   : > { %4710 = vmatmul.mubr.bf16.gmra.mrb[36].mxu0 %v6077_v7  ;;  %4854 = vmatmul.mubr.bf16.gmra.mrb[20].mxu1 %v6103_v60  ;;  %v5467_v60 = vld [vmem:[#allocation8 + $0x200] sm:$0xff]  }
 0x256   : > { %4713 = vmatprep.mubr.bf16.mxu0 %v6067_v3  ;;  %4857 = vmatprep.mubr.bf16.mxu1 %v6113_v0  ;;  %v5468_v0 = vld [vmem:[#allocation8 + $0x208] sm:$0xff]  }
 0x257   : > { %4886 = vmatpush3.bf16.msra.mxu1 %v5461_v44 }
 0x258   : > { %4887 = vmatprep.subr.bf16.mxu1 %v5462_v45 }
 0x25b   : > { %4888 = vmatpush3.bf16.msra.mxu1 %v5462_v45 }
 0x25c   : > { %4889 = vmatprep.subr.bf16.mxu1 %v5463_v26 }
 0x25d   : > { %4714 = vmatmul.mubr.bf16.gmra.mrb[40].mxu0 %v6107_v61  ;;  %4858 = vmatmul.mubr.bf16.gmra.mrb[24].mxu1 %v6134_v59  ;;  %v5469_v59 = vld [vmem:[#allocation8 + $0x210] sm:$0xff]  }
 0x25e   : > { %4717 = vmatprep.mubr.bf16.mxu0 %v6715_v18  ;;  %4861 = vmatprep.mubr.bf16.mxu1 %v6144_v42  ;;  %v5470_v42 = vld [vmem:[#allocation8 + $0x218] sm:$0xff]  }
 0x25f   : > { %4890 = vmatpush3.bf16.msra.mxu1 %v5463_v26 }
 0x260   : > { %4891 = vmatprep.subr.bf16.mxu1 %v5464_v29 }
 0x263   : > { %4892 = vmatpush3.bf16.msra.mxu1 %v5464_v29 }
 0x264   : > { %4893 = vmatprep.subr.bf16.mxu1 %v5465_v6 }
 0x265   : > { %4718 = vmatmul.mubr.bf16.gmra.mrb[44].mxu0 %v6716_v9  ;;  %4862 = vmatmul.mubr.bf16.gmra.mrb[28].mxu1 %v6163_v16  ;;  %v5471_v16 = vld [vmem:[#allocation8 + $0x220] sm:$0xff]  }
 0x266   : > { %4865 = vmatprep.mubr.bf16.mxu1 %v6174_v50 }
 0x267   : > { %4894 = vmatpush3.bf16.msra.mxu1 %v5465_v6 }
 0x268   : > { %4895 = vmatprep.subr.bf16.mxu1 %v5466_v11 }
 0x26b   : > { %4896 = vmatpush3.bf16.msra.mxu1 %v5466_v11 }
 0x26c   : > { %4929 = vmatprep.subr.bf16.mxu1 %v5467_v60 }
 0x26d   : > { %4866 = vmatmul.mubr.bf16.gmra.mrb[0].mxu1 %v6196_v28 }
 0x26e   : > { %4869 = vmatprep.mubr.bf16.mxu1 %v6207_v8 }
 0x275   : > { %4870 = vmatmul.mubr.bf16.gmra.mrb[4].mxu1 %v6228_v43 }
 0x276   : > { %4873 = vmatprep.mubr.bf16.mxu1 %v6238_v40 }
 0x27d   : > { %4874 = vmatmul.mubr.bf16.gmra.mrb[8].mxu1 %v6260_v27 }
 0x27e   : > { %4877 = vmatprep.mubr.bf16.mxu1 %v6306_v46 }
 0x285   : > { %4878 = vmatmul.mubr.bf16.gmra.mrb[12].mxu1 %v6713_v19 }
 0x286   : > { %4897 = vmatprep.mubr.bf16.mxu1 %v6010_v56  ;;  %v5472_v56 = vld [vmem:[#allocation8 + $0x228] sm:$0xff]  }
 0x28d   : > { %4898 = vmatmul.mubr.bf16.vlgmr.msra.gmra.mrb[16].mxu1 %v6038_v23  ;;  %v5474_v23 = vld [vmem:[#allocation8 + $0x238] sm:$0xff]  }
 0x28e   : > { %4930 = vmatpush3.bf16.msra.mxu1 %v5467_v60  ;;  %4901 = vmatprep.mubr.bf16.mxu1 %v6032_v20  ;;  %v5473_v20 = vld [vmem:[#allocation8 + $0x230] sm:$0xff]  }
 0x28f   : > { %4931 = vmatprep.subr.bf16.mxu1 %v5468_v0 }
 0x292   : > { %4932 = vmatpush3.bf16.msra.mxu1 %v5468_v0 }
 0x293   : > { %4933 = vmatprep.subr.bf16.mxu1 %v5469_v59 }
 0x295   : > { %4902 = vmatmul.mubr.bf16.gmra.mrb[20].mxu1 %v6069_v4  ;;  %v5476_v4 = vld [vmem:[#allocation9 + $0x8] sm:$0xff]  }
 0x296   : > { %4905 = vmatprep.mubr.bf16.mxu1 %v6063_v1  ;;  %4934 = vmatpush3.bf16.msra.mxu1 %v5469_v59  ;;  %v5475_v1 = vld [vmem:[#allocation9] sm:$0xff]  }
 0x297   : > { %4935 = vmatprep.subr.bf16.mxu1 %v5470_v42  ;;  %4977 = vmatprep.subr.bf16.mxu0 %v5475_v1 }
 0x298   : > { %4978 = vmatpush3.bf16.msra.mxu0 %v5475_v1 }
 0x299   : > { %4979 = vmatprep.subr.bf16.mxu0 %v5476_v4 }
 0x29a   : > { %4936 = vmatpush3.bf16.msra.mxu1 %v5470_v42 }
 0x29b   : > { %4937 = vmatprep.subr.bf16.mxu1 %v5471_v16 }
 0x29c   : > { %4980 = vmatpush3.bf16.msra.mxu0 %v5476_v4 }
 0x29d   : > { %4906 = vmatmul.mubr.bf16.gmra.mrb[24].mxu1 %v6099_v58  ;;  %v5478_v58 = vld [vmem:[#allocation9 + $0x18] sm:$0xff]  }
 0x29e   : > { %4909 = vmatprep.mubr.bf16.mxu1 %v6093_v53  ;;  %4938 = vmatpush3.bf16.msra.mxu1 %v5471_v16  ;;  %v5477_v53 = vld [vmem:[#allocation9 + $0x10] sm:$0xff]  }
 0x29f   : > { %4939 = vmatprep.subr.bf16.mxu1 %v5472_v56  ;;  %4981 = vmatprep.subr.bf16.mxu0 %v5477_v53 }
 0x2a0   : > { %4982 = vmatpush3.bf16.msra.mxu0 %v5477_v53 }
 0x2a1   : > { %4983 = vmatprep.subr.bf16.mxu0 %v5478_v58 }
 0x2a2   : > { %4940 = vmatpush3.bf16.msra.mxu1 %v5472_v56 }
 0x2a3   : > { %4941 = vmatprep.subr.bf16.mxu1 %v5473_v20 }
 0x2a4   : > { %4984 = vmatpush3.bf16.msra.mxu0 %v5478_v58 }
 0x2a5   : > { %4910 = vmatmul.mubr.bf16.gmra.mrb[28].mxu1 %v6129_v52 }
 0x2a6   : > { %4913 = vmatprep.mubr.bf16.mxu1 %v6123_v48  ;;  %4942 = vmatpush3.bf16.msra.mxu1 %v5473_v20 }
 0x2a7   : > { %4943 = vmatprep.subr.bf16.mxu1 %v5474_v23 }
 0x2aa   : > { %4944 = vmatpush3.bf16.msra.mxu1 %v5474_v23 }
 0x2ad   : > { %4914 = vmatmul.mubr.bf16.gmra.mrb[0].mxu1 %v6159_v33  ;;  %v5479_v33 = vld [vmem:[#allocation9 + $0x20] sm:$0xff]  }
 0x2ae   : > { %4917 = vmatprep.mubr.bf16.mxu1 %v6156_v63  ;;  %4985 = vmatprep.subr.bf16.mxu0 %v5479_v33 }
 0x2af   : > { %4986 = vmatpush3.bf16.msra.mxu0 %v5479_v33 }
 0x2b5   : > { %4918 = vmatmul.mubr.bf16.gmra.mrb[4].mxu1 %v6192_v38 }
 0x2b6   : > { %4921 = vmatprep.mubr.bf16.mxu1 %v6190_v49 }
 0x2bd   : > { %4922 = vmatmul.mubr.bf16.gmra.mrb[8].mxu1 %v6224_v36 }
 0x2be   : > { %4925 = vmatprep.mubr.bf16.mxu1 %v6222_v55 }
 0x2c5   : > { %4926 = vmatmul.mubr.bf16.gmra.mrb[12].mxu1 %v6713_v19 }
 0x2c6   : > { %4945 = vmatprep.mubr.bf16.mxu1 %v6036_v22 }
 0x2cd   : > { %4946 = vmatmul.mubr.bf16.vlgmr.msra.gmra.mrb[16].mxu1 %v6077_v7 }
 0x2ce   : > { %4949 = vmatprep.mubr.bf16.mxu1 %v6067_v3 }
 0x2d5   : > { %4950 = vmatmul.mubr.bf16.gmra.mrb[20].mxu1 %v6107_v61 }
 0x2d6   : > { %4953 = vmatprep.mubr.bf16.mxu1 %v6715_v18 }
 0x2dd   : > { %4954 = vmatmul.mubr.bf16.gmra.mrb[24].mxu1 %v6716_v9 }
 0x2de   : > { %4957 = vmatprep.mubr.bf16.mxu1 %v6719_v12  ;;  %v6454_v12 = vld [vmem:[%s6650_s4] ss:$0 sm:$0xff] }
 0x2e5   : > { %4958 = vmatmul.mubr.bf16.gmra.mrb[28].mxu1 %v6720_v62 }
 0x2e6   : > { %4961 = vmatprep.mubr.bf16.mxu1 %v6723_v17 }
 0x2ed   : > { %4962 = vmatmul.mubr.bf16.gmra.mrb[0].mxu1 %v6724_v24 }
 0x2ee   : > { %4965 = vmatprep.mubr.bf16.mxu1 %v6725_v31 }
 0x2f5   : > { %4966 = vmatmul.mubr.bf16.gmra.mrb[4].mxu1 %v6232_v10 }
 0x2f6   : > { %4969 = vmatprep.mubr.bf16.mxu1 %v6244_v5  ;;  %v5480_v5 = vld [vmem:[#allocation9 + $0x28] sm:$0xff]  }
 0x2f7   : > { %4987 = vmatprep.subr.bf16.mxu0 %v5480_v5 }
 0x2f8   : > { %4988 = vmatpush3.bf16.msra.mxu0 %v5480_v5 }
 0x2f9   : > { %4989 = vmatprep.subr.bf16.mxu0 %v5481_v30 }
 0x2fc   : > { %4990 = vmatpush3.bf16.msra.mxu0 %v5481_v30 }
 0x2fd   : > { %4970 = vmatmul.mubr.bf16.gmra.mrb[8].mxu1 %v6264_v51 }
 0x2fe   : > { %4973 = vmatprep.mubr.bf16.mxu1 %v6256_v47 }
 0x300   : > { %v6412_v36 = vpop.f32.mrb[48].mxu0 }
 0x301   : > { %v6414_v38 = vpop.f32.mrb[49].mxu0 }
 0x302   : > { %v6416_v22 = vpop.f32.mrb[50].mxu0 }
 0x303   : > { %v6418_v3 = vpop.f32.mrb[51].mxu0 }
 0x305   : > { %4974 = vmatmul.mubr.bf16.gmra.mrb[12].mxu1 %v6713_v19  ;;  %v5482_v19 = vld [vmem:[#allocation9 + $0x38] sm:$0xff]  }
 0x306   : > { %4991 = vmatprep.subr.bf16.mxu0 %v5482_v19 }
 0x307   : > { %4992 = vmatpush3.bf16.msra.mxu0 %v5482_v19 }
 0x308   : > { %v6421_v7 = vpop.f32.mrb[52].mxu0 }
 0x309   : > { %v6423_v55 = vpop.f32.mrb[53].mxu0 }
 0x30a   : > { %v6425_v61 = vpop.f32.mrb[54].mxu0 }
 0x30b   : > { %v6427_v48 = vpop.f32.mrb[55].mxu0 }
 0x310   : > { %v6429_v49 = vpop.f32.mrb[56].mxu0 }
 0x311   : > { %v6431_v52 = vpop.f32.mrb[57].mxu0 }
 0x312   : > { %v6433_v63 = vpop.f32.mrb[58].mxu0 }
 0x313   : > { %v6435_v50 = vpop.f32.mrb[59].mxu0 }
 0x318   : > { %v6437_v28 = vpop.f32.mrb[60].mxu0 }
 0x319   : > { %v6439_v8 = vpop.f32.mrb[61].mxu0 }
 0x31a   : > { %v6441_v43 = vpop.f32.mrb[62].mxu0 }
 0x31b   : > { %v6443_v10 = vpop.f32.mrb[63].mxu0 }
 0x320   : > { %v4707_v40 = vpop.f32.mrb[32].mxu0 }
 0x321   : > { %v1898_v47 = vpop.f32.mrb[33].mxu0 }
 0x322   : > { %v4708_v27 = vpop.f32.mrb[34].mxu0 }
 0x323   : > { %v1901_v51 = vpop.f32.mrb[35].mxu0 }
 0x328   : > { %v4711_v46 = vpop.f32.mrb[36].mxu0 }
 0x329   : > { %v1914_v37 = vpop.f32.mrb[37].mxu0 }
 0x32a   : > { %v4712_v13 = vpop.f32.mrb[38].mxu0 }
 0x32b   : > { %v1917_v14 = vpop.f32.mrb[39].mxu0 }
 0x330   : > { %v4715_v32 = vpop.f32.mrb[40].mxu0 }
 0x331   : > { %v1930_v57 = vpop.f32.mrb[41].mxu0 }
 0x332   : > { %v4716_v34 = vpop.f32.mrb[42].mxu0 }
 0x333   : > { %v1933_v18 = vpop.f32.mrb[43].mxu0 }
 0x338   : > { %v4719_v9 = vpop.f32.mrb[44].mxu0 }
 0x339   : > { %v6445_v2 = vpop.f32.mrb[45].mxu0 }
 0x33a   : > { %v6447_v35 = vpop.f32.mrb[46].mxu0 }
 0x33b   : > { %v6449_v25 = vpop.f32.mrb[47].mxu0 }
 0x3a0   : > { %v4947_v15 = vpop.f32.mrb[16].mxu1 }
 0x3a1   : > { %v5041_v62 = vadd.f32 %v4947_v15, %v4707_v40  ;;  %v3271_v21 = vpop.f32.mrb[17].mxu1 }
 0x3a2   : > { %v5042_v54 = vadd.f32 %v3271_v21, %v1898_v47  ;;  %v4948_v39 = vpop.f32.mrb[18].mxu1 }
 0x3a3   : > { %v3439_v17 = vadd.f32 %v5041_v62, %v6454_v12  ;;  %v5043_v24 = vadd.f32 %v4948_v39, %v4708_v27  ;;  %v3274_v31 = vpop.f32.mrb[19].mxu1 }
 0x3a4   : > { %v3437_v41 = vadd.f32 %v5042_v54, %v6454_v12  ;;  %v5044_v44 = vadd.f32 %v3274_v31, %v1901_v51 }
 0x3a5   : > { %v3440_v45 = vadd.f32 %v5043_v24, %v6454_v12  ;;  %v3471_v29 = vmax.f32 %v3439_v17, 0.0 }
 0x3a6   : > { %v3438_v26 = vadd.f32 %v5044_v44, %v6454_v12  ;;  %v3469_v11 = vmax.f32 %v3437_v41, 0.0 }
 0x3a7   : > { %v3472_v6 = vmax.f32 %v3440_v45, 0.0 }
 0x3a8   : > { %v3470_v60 = vmax.f32 %v3438_v26, 0.0  ;;  %v4951_v0 = vpop.f32.mrb[20].mxu1 }
 0x3a9   : > { %v3502_v59 = vpack.c.bf16 %v3472_v6, %v3471_v29  ;;  %v5045_v42 = vadd.f32 %v4951_v0, %v4711_v46  ;;  %v3287_v16 = vpop.f32.mrb[21].mxu1 }
 0x3aa   : > { %v5046_v56 = vadd.f32 %v3287_v16, %v1914_v37  ;;  %v4952_v20 = vpop.f32.mrb[22].mxu1  ;;  %v3501_v23 = vpack.c.bf16 %v3470_v60, %v3469_v11 }
 0x3ab   : > { %v3443_v1 = vadd.f32 %v5045_v42, %v6454_v12  ;;  %v5047_v4 = vadd.f32 %v4952_v20, %v4712_v13  ;;  %v3290_v53 = vpop.f32.mrb[23].mxu1 }
 0x3ac   : > { %v3441_v58 = vadd.f32 %v5046_v56, %v6454_v12  ;;  %v5048_v33 = vadd.f32 %v3290_v53, %v1917_v14  ;;  %4993 = vmatprep.mubr.bf16.mxu0 %v3501_v23 }
 0x3ad   : > { %v3444_v40 = vadd.f32 %v5047_v4, %v6454_v12  ;;  %4994 = vmatmul.mubr.bf16.vlgmr.msra.gmra.mrb[64].mxu0 %v3502_v59  ;;  %v3475_v47 = vmax.f32 %v3443_v1, 0.0 }
 0x3ae   : > { %v3442_v5 = vadd.f32 %v5048_v33, %v6454_v12  ;;  %v3473_v51 = vmax.f32 %v3441_v58, 0.0 }
 0x3af   : > { %v3476_v27 = vmax.f32 %v3444_v40, 0.0 }
 0x3b0   : > { %v3474_v30 = vmax.f32 %v3442_v5, 0.0  ;;  %v4955_v46 = vpop.f32.mrb[24].mxu1 }
 0x3b1   : > { %v5049_v19 = vadd.f32 %v4955_v46, %v4715_v32  ;;  %v3303_v37 = vpop.f32.mrb[25].mxu1  ;;  %v3504_v15 = vpack.c.bf16 %v3476_v27, %v3475_v47 }
 0x3b2   : > { %v5050_v62 = vadd.f32 %v3303_v37, %v1930_v57  ;;  %v4956_v13 = vpop.f32.mrb[26].mxu1  ;;  %v3503_v21 = vpack.c.bf16 %v3474_v30, %v3473_v51 }
 0x3b3   : > { %v3447_v54 = vadd.f32 %v5049_v19, %v6454_v12  ;;  %v5051_v14 = vadd.f32 %v4956_v13, %v4716_v34  ;;  %v3306_v39 = vpop.f32.mrb[27].mxu1 }
 0x3b4   : > { %v3445_v17 = vadd.f32 %v5050_v62, %v6454_v12  ;;  %v5052_v24 = vadd.f32 %v3306_v39, %v1933_v18  ;;  %4997 = vmatprep.mubr.bf16.mxu0 %v3503_v21 }
 0x3b5   : > { %v3448_v31 = vadd.f32 %v5051_v14, %v6454_v12  ;;  %4998 = vmatmul.mubr.bf16.gmra.mrb[68].mxu0 %v3504_v15  ;;  %v3479_v44 = vmax.f32 %v3447_v54, 0.0 }
 0x3b6   : > { %v3446_v41 = vadd.f32 %v5052_v24, %v6454_v12  ;;  %v3477_v45 = vmax.f32 %v3445_v17, 0.0 }
 0x3b7   : > { %v3480_v32 = vmax.f32 %v3448_v31, 0.0 }
 0x3b8   : > { %v3478_v26 = vmax.f32 %v3446_v41, 0.0  ;;  %v4959_v57 = vpop.f32.mrb[28].mxu1 }
 0x3b9   : > { %v5053_v29 = vadd.f32 %v4959_v57, %v4719_v9  ;;  %v3319_v6 = vpop.f32.mrb[29].mxu1  ;;  %v3506_v11 = vpack.c.bf16 %v3480_v32, %v3479_v44 }
 0x3ba   : > { %v5054_v34 = vadd.f32 %v3319_v6, %v6445_v2  ;;  %v4960_v60 = vpop.f32.mrb[30].mxu1  ;;  %v3505_v0 = vpack.c.bf16 %v3478_v26, %v3477_v45 }
 0x3bb   : > { %v3451_v18 = vadd.f32 %v5053_v29, %v6454_v12  ;;  %v5055_v59 = vadd.f32 %v4960_v60, %v6447_v35  ;;  %v3322_v42 = vpop.f32.mrb[31].mxu1 }
 0x3bc   : > { %v3449_v16 = vadd.f32 %v5054_v34, %v6454_v12  ;;  %v5056_v56 = vadd.f32 %v3322_v42, %v6449_v25  ;;  %5001 = vmatprep.mubr.bf16.mxu0 %v3505_v0 }
 0x3bd   : > { %v3452_v20 = vadd.f32 %v5055_v59, %v6454_v12  ;;  %5002 = vmatmul.mubr.bf16.gmra.mrb[72].mxu0 %v3506_v11  ;;  %v3483_v23 = vmax.f32 %v3451_v18, 0.0 }
 0x3be   : > { %v3450_v9 = vadd.f32 %v5056_v56, %v6454_v12  ;;  %v3481_v2 = vmax.f32 %v3449_v16, 0.0 }
 0x3bf   : > { %v3484_v1 = vmax.f32 %v3452_v20, 0.0 }
 0x3c0   : > { %v3482_v4 = vmax.f32 %v3450_v9, 0.0  ;;  %v4963_v53 = vpop.f32.mrb[0].mxu1 }
 0x3c1   : > { %v5057_v58 = vadd.f32 %v4963_v53, %v6412_v36  ;;  %v3335_v33 = vpop.f32.mrb[1].mxu1  ;;  %v3508_v35 = vpack.c.bf16 %v3484_v1, %v3483_v23 }
 0x3c2   : > { %v5058_v40 = vadd.f32 %v3335_v33, %v6414_v38  ;;  %v4964_v5 = vpop.f32.mrb[2].mxu1  ;;  %v3507_v47 = vpack.c.bf16 %v3482_v4, %v3481_v2 }
 0x3c3   : > { %v3455_v25 = vadd.f32 %v5057_v58, %v6454_v12  ;;  %v5059_v27 = vadd.f32 %v4964_v5, %v6416_v22  ;;  %v3338_v51 = vpop.f32.mrb[3].mxu1 }
 0x3c4   : > { %v3453_v30 = vadd.f32 %v5058_v40, %v6454_v12  ;;  %v5060_v46 = vadd.f32 %v3338_v51, %v6418_v3  ;;  %5005 = vmatprep.mubr.bf16.mxu0 %v3507_v47 }
 0x3c5   : > { %v3456_v19 = vadd.f32 %v5059_v27, %v6454_v12  ;;  %5006 = vmatmul.mubr.bf16.gmra.mrb[76].mxu0 %v3508_v35  ;;  %v3487_v37 = vmax.f32 %v3455_v25, 0.0 }
 0x3c6   : > { %v3454_v36 = vadd.f32 %v5060_v46, %v6454_v12  ;;  %v3485_v38 = vmax.f32 %v3453_v30, 0.0 }
 0x3c7   : > { %v3488_v15 = vmax.f32 %v3456_v19, 0.0  ;;  %v4218_v19 = vld [vmem:[%s5932_s20 + $0x8] sm:$0xff]  }
 0x3c8   : > { %v3486_v62 = vmax.f32 %v3454_v36, 0.0  ;;  %v4967_v13 = vpop.f32.mrb[4].mxu1  ;;  %v4155_v36 = vld [vmem:[%s5932_s20] sm:$0xff]  }
 0x3c9   : > { %v5061_v21 = vadd.f32 %v4967_v13, %v6421_v7  ;;  %v3351_v54 = vpop.f32.mrb[5].mxu1  ;;  %v3510_v22 = vpack.c.bf16 %v3488_v15, %v3487_v37  ;;  %v4160_v37 = vunpack.c.l.bf16 %v4218_v19  ;;  %v4161_v13 = vunpack.c.h.bf16 %v4218_v19  ;;  %v4223_v19 = vld [vmem:[%s5932_s20 + $0x30] sm:$0xff]  }
 0x3ca   : > { %v5062_v14 = vadd.f32 %v3351_v54, %v6423_v55  ;;  %v4968_v39 = vpop.f32.mrb[6].mxu1  ;;  %v3509_v17 = vpack.c.bf16 %v3486_v62, %v3485_v38  ;;  %v4156_v38 = vunpack.c.l.bf16 %v4155_v36 }
 0x3cb   : > { %v3459_v3 = vadd.f32 %v5061_v21, %v6454_v12  ;;  %v5063_v24 = vadd.f32 %v4968_v39, %v6425_v61  ;;  %v3354_v31 = vpop.f32.mrb[7].mxu1 }
 0x3cc   : > { %v3457_v41 = vadd.f32 %v5062_v14, %v6454_v12  ;;  %v5064_v44 = vadd.f32 %v3354_v31, %v6427_v48  ;;  %5009 = vmatprep.mubr.bf16.mxu0 %v3509_v17  ;;  %v4220_v31 = vld [vmem:[%s5932_s20 + $0x18] sm:$0xff]  }
 0x3cd   : > { %v3460_v32 = vadd.f32 %v5063_v24, %v6454_v12  ;;  %5010 = vmatmul.mubr.bf16.gmra.mrb[80].mxu0 %v3510_v22  ;;  %v3491_v45 = vmax.f32 %v3459_v3, 0.0  ;;  %v4157_v22 = vunpack.c.h.bf16 %v4155_v36 }
 0x3ce   : > { %v3458_v7 = vadd.f32 %v5064_v44, %v6454_v12  ;;  %v3489_v55 = vmax.f32 %v3457_v41, 0.0 }
 0x3cf   : > { %v3492_v26 = vmax.f32 %v3460_v32, 0.0  ;;  %v4219_v32 = vld [vmem:[%s5932_s20 + $0x10] sm:$0xff]  }
 0x3d0   : > { %v3490_v57 = vmax.f32 %v3458_v7, 0.0  ;;  %v4971_v29 = vpop.f32.mrb[8].mxu1 }
 0x3d1   : > { %v5065_v6 = vadd.f32 %v4971_v29, %v6429_v49  ;;  %v3367_v11 = vpop.f32.mrb[9].mxu1  ;;  %v3512_v61 = vpack.c.bf16 %v3492_v26, %v3491_v45 }
 0x3d2   : > { %v5066_v34 = vadd.f32 %v3367_v11, %v6431_v52  ;;  %v4972_v60 = vpop.f32.mrb[10].mxu1  ;;  %v3511_v0 = vpack.c.bf16 %v3490_v57, %v3489_v55  ;;  %v4168_v55 = vunpack.c.l.bf16 %v4220_v31 }
 0x3d3   : > { %v3463_v48 = vadd.f32 %v5065_v6, %v6454_v12  ;;  %v5067_v18 = vadd.f32 %v4972_v60, %v6433_v63  ;;  %v3370_v59 = vpop.f32.mrb[11].mxu1  ;;  %v4164_v6 = vunpack.c.l.bf16 %v4219_v32 }
 0x3d4   : > { %v3461_v42 = vadd.f32 %v5066_v34, %v6454_v12  ;;  %v5068_v16 = vadd.f32 %v3370_v59, %v6435_v50  ;;  %5013 = vmatprep.mubr.bf16.mxu0 %v3511_v0  ;;  %v4169_v34 = vunpack.c.h.bf16 %v4220_v31 }
 0x3d5   : > { %v3464_v56 = vadd.f32 %v5067_v18, %v6454_v12  ;;  %5014 = vmatmul.mubr.bf16.gmra.mrb[84].mxu0 %v3512_v61  ;;  %v3495_v20 = vmax.f32 %v3463_v48, 0.0  ;;  %v4165_v48 = vunpack.c.h.bf16 %v4219_v32  ;;  %v4226_v32 = vld [vmem:[%s5932_s20 + $0x48] sm:$0xff]  }
 0x3d6   : > { %v3462_v49 = vadd.f32 %v5068_v16, %v6454_v12  ;;  %v3493_v52 = vmax.f32 %v3461_v42, 0.0 }
 0x3d7   : > { %v3496_v9 = vmax.f32 %v3464_v56, 0.0 }
 0x3d8   : > { %v3494_v23 = vmax.f32 %v3462_v49, 0.0  ;;  %v4975_v1 = vpop.f32.mrb[12].mxu1  ;;  %v4222_v49 = vld [vmem:[%s5932_s20 + $0x28] sm:$0xff]  }
 0x3d9   : > { %v5069_v2 = vadd.f32 %v4975_v1, %v6437_v28  ;;  %v3383_v4 = vpop.f32.mrb[13].mxu1  ;;  %v3514_v63 = vpack.c.bf16 %v3496_v9, %v3495_v20 }
 0x3da   : > { %v5070_v53 = vadd.f32 %v3383_v4, %v6439_v8  ;;  %v4976_v58 = vpop.f32.mrb[14].mxu1  ;;  %v3513_v33 = vpack.c.bf16 %v3494_v23, %v3493_v52  ;;  %v4221_v52 = vld [vmem:[%s5932_s20 + $0x20] sm:$0xff]   ;;  %v4176_v4 = vunpack.c.l.bf16 %v4222_v49 }
 0x3db   : > { %v3467_v50 = vadd.f32 %v5069_v2, %v6454_v12  ;;  %v5071_v35 = vadd.f32 %v4976_v58, %v6441_v43  ;;  %v3386_v40 = vpop.f32.mrb[15].mxu1  ;;  %v4172_v58 = vunpack.c.l.bf16 %v4221_v52 }
 0x3dc   : > { %v3465_v5 = vadd.f32 %v5070_v53, %v6454_v12  ;;  %v5072_v47 = vadd.f32 %v3386_v40, %v6443_v10  ;;  %5017 = vmatprep.mubr.bf16.mxu0 %v3513_v33  ;;  %v6512_v10 = vld [vmem:[%s6652_s6] ss:$0 sm:$0xff] }
 0x3dd   : > { %v3468_v28 = vadd.f32 %v5071_v35, %v6454_v12  ;;  %5018 = vmatmul.mubr.bf16.gmra.mrb[88].mxu0 %v3514_v63  ;;  %v3499_v25 = vmax.f32 %v3467_v50, 0.0  ;;  %v4177_v35 = vunpack.c.h.bf16 %v4222_v49 }
 0x3de   : > { %v3466_v8 = vadd.f32 %v5072_v47, %v6454_v12  ;;  %v3497_v51 = vmax.f32 %v3465_v5, 0.0  ;;  %v4173_v47 = vunpack.c.h.bf16 %v4221_v52  ;;  %v4228_v52 = vld [vmem:[%s5932_s20 + $0x58] sm:$0xff]  }
 0x3df   : > { %v3500_v27 = vmax.f32 %v3468_v28, 0.0 }
 0x3e0   : > { %v3498_v30 = vmax.f32 %v3466_v8, 0.0 }
 0x3e1   : > { %v3516_v46 = vpack.c.bf16 %v3500_v27, %v3499_v25 }
 0x3e2   : > { %v3515_v43 = vpack.c.bf16 %v3498_v30, %v3497_v51  ;;  %v4224_v30 = vld [vmem:[%s5932_s20 + $0x38] sm:$0xff]  }
 0x3e4   : > { %5021 = vmatprep.mubr.bf16.mxu0 %v3515_v43 }
 0x3e5   : > { %5022 = vmatmul.mubr.bf16.gmra.mrb[92].mxu0 %v3516_v46 }
 0x480   : > { %v4995_v15 = vpop.f32.mrb[64].mxu0 }
 0x481   : > { %v3631_v12 = vadd.f32 %v4995_v15, %v6512_v10  ;;  %v3622_v62 = vpop.f32.mrb[65].mxu0 }
 0x482   : > { %v3623_v21 = vadd.f32 %v6512_v10, %v3622_v62  ;;  %v4996_v54 = vpop.f32.mrb[66].mxu0 }
 0x483   : > { %v3815_v14 = vadd.f32 %v4160_v37, %v3631_v12  ;;  %v3634_v39 = vadd.f32 %v4996_v54, %v6512_v10  ;;  %v3625_v17 = vpop.f32.mrb[67].mxu0 }
 0x484   : > { %v3813_v3 = vadd.f32 %v4156_v38, %v3623_v21  ;;  %v3626_v24 = vadd.f32 %v6512_v10, %v3625_v17  ;;  %v4184_v38 = vunpack.c.l.bf16 %v4224_v30  ;;  %v4181_v17 = vunpack.c.h.bf16 %v4223_v19 }
 0x485   : > { %v3847_v41 = vmax.f32 %v3815_v14, 0.0  ;;  %v3816_v44 = vadd.f32 %v4161_v13, %v3634_v39  ;;  %v4180_v13 = vunpack.c.l.bf16 %v4223_v19  ;;  %v4230_v19 = vld [vmem:[%s5932_s20 + $0x68] sm:$0xff]  }
 0x486   : > { %v3845_v7 = vmax.f32 %v3813_v3, 0.0  ;;  %v3814_v45 = vadd.f32 %v4157_v22, %v3626_v24  ;;  %v4185_v22 = vunpack.c.h.bf16 %v4224_v30 }
 0x487   : > { %3879 = vst [vmem:[%s6521_s12 + $0x10] sm:$0xff] %v3847_v41  ;;  %v3848_v26 = vmax.f32 %v3816_v44, 0.0 }
 0x488   : > { %3877 = vst [vmem:[%s6521_s12] sm:$0xff] %v3845_v7  ;;  %v3846_v57 = vmax.f32 %v3814_v45, 0.0  ;;  %v4999_v29 = vpop.f32.mrb[68].mxu0 }
 0x489   : > { %3880 = vst [vmem:[%s6521_s12 + $0x18] sm:$0xff] %v3848_v26  ;;  %v3647_v11 = vadd.f32 %v4999_v29, %v6512_v10  ;;  %v3638_v61 = vpop.f32.mrb[69].mxu0  ;;  %v4225_v26 = vld [vmem:[%s5932_s20 + $0x40] sm:$0xff]  }
 0x48a   : > { %3878 = vst [vmem:[%s6521_s12 + $0x8] sm:$0xff] %v3846_v57  ;;  %v3639_v60 = vadd.f32 %v6512_v10, %v3638_v61  ;;  %v5000_v0 = vpop.f32.mrb[70].mxu0 }
 0x48b   : > { %v3819_v18 = vadd.f32 %v4168_v55, %v3647_v11  ;;  %v3650_v59 = vadd.f32 %v5000_v0, %v6512_v10  ;;  %v3641_v42 = vpop.f32.mrb[71].mxu0 }
 0x48c   : > { %v3817_v16 = vadd.f32 %v4164_v6, %v3639_v60  ;;  %v3642_v56 = vadd.f32 %v6512_v10, %v3641_v42  ;;  %v4192_v6 = vunpack.c.l.bf16 %v4226_v32  ;;  %v4189_v42 = vunpack.c.h.bf16 %v4225_v26 }
 0x48d   : > { %v3851_v20 = vmax.f32 %v3819_v18, 0.0  ;;  %v3820_v9 = vadd.f32 %v4169_v34, %v3650_v59  ;;  %v4188_v34 = vunpack.c.l.bf16 %v4225_v26  ;;  %v4232_v26 = vld [vmem:[%s5932_s20 + $0x78] sm:$0xff]  }
 0x48e   : > { %v3849_v23 = vmax.f32 %v3817_v16, 0.0  ;;  %v3818_v1 = vadd.f32 %v4165_v48, %v3642_v56  ;;  %v4193_v48 = vunpack.c.h.bf16 %v4226_v32 }
 0x48f   : > { %3883 = vst [vmem:[%s6521_s12 + $0x30] sm:$0xff] %v3851_v20  ;;  %v3852_v2 = vmax.f32 %v3820_v9, 0.0 }
 0x490   : > { %3881 = vst [vmem:[%s6521_s12 + $0x20] sm:$0xff] %v3849_v23  ;;  %v3850_v63 = vmax.f32 %v3818_v1, 0.0  ;;  %v5003_v53 = vpop.f32.mrb[72].mxu0 }
 0x491   : > { %3884 = vst [vmem:[%s6521_s12 + $0x38] sm:$0xff] %v3852_v2  ;;  %v3663_v33 = vadd.f32 %v5003_v53, %v6512_v10  ;;  %v3654_v50 = vpop.f32.mrb[73].mxu0  ;;  %v4227_v2 = vld [vmem:[%s5932_s20 + $0x50] sm:$0xff]  }
 0x492   : > { %3882 = vst [vmem:[%s6521_s12 + $0x28] sm:$0xff] %v3850_v63  ;;  %v3655_v40 = vadd.f32 %v6512_v10, %v3654_v50  ;;  %v5004_v5 = vpop.f32.mrb[74].mxu0 }
 0x493   : > { %v3823_v28 = vadd.f32 %v4176_v4, %v3663_v33  ;;  %v3666_v8 = vadd.f32 %v5004_v5, %v6512_v10  ;;  %v3657_v25 = vpop.f32.mrb[75].mxu0 }
 0x494   : > { %v3821_v27 = vadd.f32 %v4172_v58, %v3655_v40  ;;  %v3658_v51 = vadd.f32 %v6512_v10, %v3657_v25  ;;  %v4200_v58 = vunpack.c.l.bf16 %v4228_v52  ;;  %v4197_v25 = vunpack.c.h.bf16 %v4227_v2 }
 0x495   : > { %v3855_v46 = vmax.f32 %v3823_v28, 0.0  ;;  %v3824_v43 = vadd.f32 %v4177_v35, %v3666_v8  ;;  %v4196_v35 = vunpack.c.l.bf16 %v4227_v2 }
 0x496   : > { %v3853_v36 = vmax.f32 %v3821_v27, 0.0  ;;  %v3822_v37 = vadd.f32 %v4173_v47, %v3658_v51  ;;  %v4201_v47 = vunpack.c.h.bf16 %v4228_v52 }
 0x497   : > { %3887 = vst [vmem:[%s6521_s12 + $0x50] sm:$0xff] %v3855_v46  ;;  %v3856_v15 = vmax.f32 %v3824_v43, 0.0 }
 0x498   : > { %3885 = vst [vmem:[%s6521_s12 + $0x40] sm:$0xff] %v3853_v36  ;;  %v3854_v12 = vmax.f32 %v3822_v37, 0.0  ;;  %v5007_v62 = vpop.f32.mrb[76].mxu0 }
 0x499   : > { %3888 = vst [vmem:[%s6521_s12 + $0x58] sm:$0xff] %v3856_v15  ;;  %v3679_v21 = vadd.f32 %v5007_v62, %v6512_v10  ;;  %v3670_v54 = vpop.f32.mrb[77].mxu0  ;;  %v4229_v15 = vld [vmem:[%s5932_s20 + $0x60] sm:$0xff]  }
 0x49a   : > { %3886 = vst [vmem:[%s6521_s12 + $0x48] sm:$0xff] %v3854_v12  ;;  %v3671_v14 = vadd.f32 %v6512_v10, %v3670_v54  ;;  %v5008_v39 = vpop.f32.mrb[78].mxu0 }
 0x49b   : > { %v3827_v3 = vadd.f32 %v4184_v38, %v3679_v21  ;;  %v3682_v24 = vadd.f32 %v5008_v39, %v6512_v10  ;;  %v3673_v31 = vpop.f32.mrb[79].mxu0 }
 0x49c   : > { %v3825_v41 = vadd.f32 %v4180_v13, %v3671_v14  ;;  %v3674_v44 = vadd.f32 %v6512_v10, %v3673_v31  ;;  %v4208_v13 = vunpack.c.l.bf16 %v4230_v19  ;;  %v4205_v31 = vunpack.c.h.bf16 %v4229_v15 }
 0x49d   : > { %v3859_v7 = vmax.f32 %v3827_v3, 0.0  ;;  %v3828_v45 = vadd.f32 %v4185_v22, %v3682_v24  ;;  %v4204_v22 = vunpack.c.l.bf16 %v4229_v15 }
 0x49e   : > { %v3857_v55 = vmax.f32 %v3825_v41, 0.0  ;;  %v3826_v57 = vadd.f32 %v4181_v17, %v3674_v44  ;;  %v4209_v17 = vunpack.c.h.bf16 %v4230_v19 }
 0x49f   : > { %3891 = vst [vmem:[%s6521_s12 + $0x70] sm:$0xff] %v3859_v7  ;;  %v3860_v29 = vmax.f32 %v3828_v45, 0.0 }
 0x4a0   : > { %3889 = vst [vmem:[%s6521_s12 + $0x60] sm:$0xff] %v3857_v55  ;;  %v3858_v11 = vmax.f32 %v3826_v57, 0.0  ;;  %v5011_v61 = vpop.f32.mrb[80].mxu0 }
 0x4a1   : > { %3892 = vst [vmem:[%s6521_s12 + $0x78] sm:$0xff] %v3860_v29  ;;  %v3695_v60 = vadd.f32 %v5011_v61, %v6512_v10  ;;  %v3686_v0 = vpop.f32.mrb[81].mxu0  ;;  %v4231_v29 = vld [vmem:[%s5932_s20 + $0x70] sm:$0xff]   ;;  %s5597_s20 = scalar_lea.vmem %s6599_s16, 4096 }
 0x4a2   : > { %3890 = vst [vmem:[%s6521_s12 + $0x68] sm:$0xff] %v3858_v11  ;;  %v3687_v18 = vadd.f32 %v6512_v10, %v3686_v0  ;;  %v5012_v59 = vpop.f32.mrb[82].mxu0  ;;  %p5598_p10 = scmp.ne.s32.totalorder %s6599_s16, %s5597_s20  ;;  %p5605_p1 = scmp.lt.s32.totalorder %s5603_s13, %s5597_s20 }
 0x4a3   : > { %v3831_v16 = vadd.f32 %v4192_v6, %v3695_v60  ;;  %v3698_v56 = vadd.f32 %v5012_v59, %v6512_v10  ;;  %v3689_v49 = vpop.f32.mrb[83].mxu0 }
 0x4a4   : > { %v3829_v20 = vadd.f32 %v4188_v34, %v3687_v18  ;;  %v3690_v9 = vadd.f32 %v6512_v10, %v3689_v49  ;;  %v4216_v34 = vunpack.c.l.bf16 %v4232_v26  ;;  %v4213_v49 = vunpack.c.h.bf16 %v4231_v29  ;;  %p5599_p3 = pnand %p5598_p10, %p5877_p5  ;;  %p5606_p2 = por %p5605_p1, %p5604_p12 }
 0x4a5   : > { %v3863_v23 = vmax.f32 %v3831_v16, 0.0  ;;  %v3832_v1 = vadd.f32 %v4193_v48, %v3698_v56  ;;  %v4212_v48 = vunpack.c.l.bf16 %v4231_v29 }
 0x4a6   : > { %v3861_v4 = vmax.f32 %v3829_v20, 0.0  ;;  %v3830_v63 = vadd.f32 %v4189_v42, %v3690_v9  ;;  %v4217_v42 = vunpack.c.h.bf16 %v4232_v26  ;;  %p5600_p7 = pneg %p5599_p3 }
 0x4a7   : > { %3895 = vst [vmem:[%s6521_s12 + $0x90] sm:$0xff] %v3863_v23  ;;  %v3864_v53 = vmax.f32 %v3832_v1, 0.0 }
 0x4a8   : > { %3893 = vst [vmem:[%s6521_s12 + $0x80] sm:$0xff] %v3861_v4  ;;  %v3862_v33 = vmax.f32 %v3830_v63, 0.0  ;;  %v5015_v50 = vpop.f32.mrb[84].mxu0  ;;  %p5607_p4 = pnand %p5606_p2, %p5600_p7 }
 0x4a9   : > { %3896 = vst [vmem:[%s6521_s12 + $0x98] sm:$0xff] %v3864_v53  ;;  %v3711_v40 = vadd.f32 %v5015_v50, %v6512_v10  ;;  %v3702_v5 = vpop.f32.mrb[85].mxu0 }
 0x4aa   : > { %3894 = vst [vmem:[%s6521_s12 + $0x88] sm:$0xff] %v3862_v33  ;;  %v3703_v28 = vadd.f32 %v6512_v10, %v3702_v5  ;;  %v5016_v8 = vpop.f32.mrb[86].mxu0 }
 0x4ab   : > { %v3835_v27 = vadd.f32 %v4200_v58, %v3711_v40  ;;  %v3714_v51 = vadd.f32 %v5016_v8, %v6512_v10  ;;  %v3705_v30 = vpop.f32.mrb[87].mxu0 }
 0x4ac   : > { %v3833_v46 = vadd.f32 %v4196_v35, %v3703_v28  ;;  %v3706_v43 = vadd.f32 %v6512_v10, %v3705_v30 }
 0x4ad   : > { %v3867_v36 = vmax.f32 %v3835_v27, 0.0  ;;  %v3836_v37 = vadd.f32 %v4201_v47, %v3714_v51 }
 0x4ae   : > { %v3865_v38 = vmax.f32 %v3833_v46, 0.0  ;;  %v3834_v12 = vadd.f32 %v4197_v25, %v3706_v43 }
 0x4af   : > { %3899 = vst [vmem:[%s6521_s12 + $0xb0] sm:$0xff] %v3867_v36  ;;  %v3868_v62 = vmax.f32 %v3836_v37, 0.0 }
 0x4b0   : > { %3897 = vst [vmem:[%s6521_s12 + $0xa0] sm:$0xff] %v3865_v38  ;;  %v3866_v21 = vmax.f32 %v3834_v12, 0.0  ;;  %v5019_v54 = vpop.f32.mrb[88].mxu0 }
 0x4b1   : > { %3900 = vst [vmem:[%s6521_s12 + $0xb8] sm:$0xff] %v3868_v62  ;;  %v3727_v14 = vadd.f32 %v5019_v54, %v6512_v10  ;;  %v3718_v39 = vpop.f32.mrb[89].mxu0 }
 0x4b2   : > { %3898 = vst [vmem:[%s6521_s12 + $0xa8] sm:$0xff] %v3866_v21  ;;  %v3719_v3 = vadd.f32 %v6512_v10, %v3718_v39  ;;  %v5020_v24 = vpop.f32.mrb[90].mxu0 }
 0x4b3   : > { %v3839_v41 = vadd.f32 %v4208_v13, %v3727_v14  ;;  %v3730_v44 = vadd.f32 %v5020_v24, %v6512_v10  ;;  %v3721_v32 = vpop.f32.mrb[91].mxu0 }
 0x4b4   : > { %v3837_v7 = vadd.f32 %v4204_v22, %v3719_v3  ;;  %v3722_v45 = vadd.f32 %v6512_v10, %v3721_v32 }
 0x4b5   : > { %v3871_v55 = vmax.f32 %v3839_v41, 0.0  ;;  %v3840_v57 = vadd.f32 %v4209_v17, %v3730_v44 }
 0x4b6   : > { %v3869_v6 = vmax.f32 %v3837_v7, 0.0  ;;  %v3838_v11 = vadd.f32 %v4205_v31, %v3722_v45 }
 0x4b7   : > { %3903 = vst [vmem:[%s6521_s12 + $0xd0] sm:$0xff] %v3871_v55  ;;  %v3872_v61 = vmax.f32 %v3840_v57, 0.0 }
 0x4b8   : > { %3901 = vst [vmem:[%s6521_s12 + $0xc0] sm:$0xff] %v3869_v6  ;;  %v3870_v60 = vmax.f32 %v3838_v11, 0.0  ;;  %v5023_v0 = vpop.f32.mrb[92].mxu0 }
 0x4b9   : > { %3904 = vst [vmem:[%s6521_s12 + $0xd8] sm:$0xff] %v3872_v61  ;;  %v3743_v18 = vadd.f32 %v5023_v0, %v6512_v10  ;;  %v3734_v59 = vpop.f32.mrb[93].mxu0 }
 0x4ba   : > { %3902 = vst [vmem:[%s6521_s12 + $0xc8] sm:$0xff] %v3870_v60  ;;  %v3735_v16 = vadd.f32 %v6512_v10, %v3734_v59  ;;  %v5024_v56 = vpop.f32.mrb[94].mxu0 }
 0x4bb   : > { %v3843_v20 = vadd.f32 %v4216_v34, %v3743_v18  ;;  %v3746_v9 = vadd.f32 %v5024_v56, %v6512_v10  ;;  %v3737_v52 = vpop.f32.mrb[95].mxu0 }
 0x4bc   : > { %v3841_v23 = vadd.f32 %v4212_v48, %v3735_v16  ;;  %v3738_v1 = vadd.f32 %v6512_v10, %v3737_v52 }
 0x4bd   : > { %v3875_v2 = vmax.f32 %v3843_v20, 0.0  ;;  %v3844_v4 = vadd.f32 %v4217_v42, %v3746_v9 }
 0x4be   : > { %v3873_v63 = vmax.f32 %v3841_v23, 0.0  ;;  %v3842_v53 = vadd.f32 %v4213_v49, %v3738_v1 }
 0x4bf   : > { %3907 = vst [vmem:[%s6521_s12 + $0xf0] sm:$0xff] %v3875_v2  ;;  %v3876_v58 = vmax.f32 %v3844_v4, 0.0 }
 0x4c0   : > { %3905 = vst [vmem:[%s6521_s12 + $0xe0] sm:$0xff] %v3873_v63  ;;  %v3874_v10 = vmax.f32 %v3842_v53, 0.0 }
 0x4c1   : > { %3908 = vst [vmem:[%s6521_s12 + $0xf8] sm:$0xff] %v3876_v58 }
 0x4c2   : > { %3906 = vst [vmem:[%s6521_s12 + $0xe8] sm:$0xff] %v3874_v10 }
 0x4c3   : > { %5610 = shalt.err (!%p5607_p4)
}
 0x4c4   : > { %s5611_s15 = scalar_lea.hbm %s6597_s11, 4096  ;;  %s5615_s8 = scalar_lea.hbm %s6653_s7, 8192 }
 0x4c5   : > { %p5612_p9 = scmp.ne.s32.totalorder %s6597_s11, %s5611_s15  ;;  %p5616_p8 = scmp.lt.u32.totalorder %s6597_s11, %s6653_s7 }
 0x4c6   : > { %p5617_p13 = scmp.lt.u32.totalorder %s5615_s8, %s5611_s15  ;;  %p5619_p10 = scmp.lt.u32.totalorder %s5611_s15, %s6597_s11 }
 0x4c7   : > { %p5613_p0 = pnand %p5612_p9, %p5877_p5 }
 0x4c8   : > { %p5618_p6 = por %p5617_p13, %p5616_p8 }
 0x4c9   : > { %p5614_p11 = pneg %p5613_p0 }
 0x4ca   : > { %p5620_p3 = por %p5619_p10, %p5618_p6 }
 0x4cc   : > { %p5621_p7 = pnand %p5620_p3, %p5614_p11 }
 0x4ce   : > { %5624 = shalt.err (!%p5621_p7)
}
 0x4cf   : > { %s5681_s29 = smov 128   ;;  %s5682_s23 = smov 8  }
 0x4d0   : > { %5311 = dma.vmem_to_hbm [thread:$0]  (%p5877_p5), %s6599_s16, 4096, %s6597_s11, %s3910_s28, %s5681_s29, %s5681_s29, %s5682_s23  }
 0x4d1 PF: > { %s6726_s20 = sld [smem:[#allocation16_spill]]  ;;  %s3938_s30 = sand.u32 1, %s5659_s24  }
 0x4d2   : > { %p6728_p1 = scmp.ge.s32.totalorder %s5671_s27, 2  ;;  %s3939_s9 = scalar_lea.sflag [#allocation5], %s3938_s30 }
 0x4d7   : > { %p6727_p12 = scmp.ne.s32.totalorder %s6726_s20, 0 }
 0x4d9   : > { %p5328_p2 = pnand %p6728_p1, %p6727_p12 }
 0x4db   : > { %5654 = dma.done.wait (!%p5328_p2), %s3939_s9, 4096  }
 0x4dc   : > { %5656 = vsyncadd (!%p5328_p2), %s3939_s9, 4294963200  ;;  %p22_p4 = scmp.ge.s32.totalorder %s5863_s22, 4   ;;  %s6729_s24 = smov %s5663_s25 }
 0x4dd   : > { %s6730_s25 = smov %s5667_s26  ;;  %s6731_s26 = smov %s5873_s18 }
 0x4de   : > { %s6732_s27 = smov %s5863_s22  ;;  %24 = sbr.rel (!%p22_p4) target bundleno = 7 (0x7), region = 124 }
 0x4e5   :  { %3944 = vsyncpa [#allocation4], 1 }
 0x4e6   :  { %3946 = vsyncpa [#allocation4 + $0x1], 1 }
 0x4e7   :  { %3947 = vsyncpa [#allocation7], 1 }
 0x4e8   :  { %3948 = vsyncpa [#allocation10], 1 }
 0x4e9   :  { %3949 = vsyncpa [#allocation5], 1 }
 0x4ea   :  { %3951 = vsyncpa [#allocation5 + $0x1], 1 }

</bundles_post_ra>
